<compile_context>
chip_gen: v7x
topology: tpu7x:2x2x1
jax: 0.10.0
libtpu: 0.0.40
codegen_flags: <defaults>
</compile_context>

<pallas_src>
import functools

import jax
import jax.numpy as jnp
import numpy as np
from jax import lax
from jax.experimental import pallas as pl
from jax.experimental.pallas import tpu as pltpu

B, C_IN, H, W = 2, 4, 16, 16
NUM_CLASSES = 8
MAX_ANN = 8
A = H * W              # one anchor per feature-map pixel
ALPHA = 0.25
GAMMA = 2.0            # focal gamma (== 2 -> implemented as a square)


# ---------------------------------------------------------------------------
# Fused kernel: detection heads (1x1 conv == MXU matmul) + FocalLoss.
# Lane axis carries the anchor/pixel dimension (A = 256) everywhere.
# ---------------------------------------------------------------------------
def fused_det_loss_kernel(x_ref, w_ref, b_ref, anc_ref, annt_ref,
                          cls_out_ref, reg_out_ref, *, batch_size):
    anc = anc_ref[...]                                   # (4, A): y1, x1, y2, x2
    a_y1, a_x1 = anc[0:1, :], anc[1:2, :]
    a_y2, a_x2 = anc[2:3, :], anc[3:4, :]

    aw = a_x2 - a_x1                                      # (1, A)
    ah = a_y2 - a_y1
    inv_aw = pl.reciprocal(aw, approx=True)               # EUP slot, off the VALU path
    inv_ah = pl.reciprocal(ah, approx=True)
    acx = a_x1 + 0.5 * aw
    acy = a_y1 + 0.5 * ah

    w = w_ref[...]                                        # (4+K, C)
    bias = b_ref[...]                                     # (4+K, 1)

    cls_total = jnp.zeros((1, 1), jnp.float32)
    reg_total = jnp.zeros((1, 1), jnp.float32)

    # Tiny batch (B=2): unroll inside one grid step — no per-image grid overhead.
    for j in range(batch_size):
        x = x_ref[j]                                      # (C, P)  P == A on lanes
        # One combined MXU push for both heads: (4+K, C) @ (C, P) -> (4+K, A)
        heads = jnp.dot(w, x, preferred_element_type=jnp.float32) + bias
        regression = heads[0:4, :]                        # (4, A): dy, dx, dh, dw
        classification = jnp.clip(jax.nn.sigmoid(heads[4:, :]),
                                  1e-4, 1.0 - 1e-4)       # (K, A)

        annt = annt_ref[j]                                # (M, 5): x1, y1, x2, y2, cls
        b_x1, b_y1 = annt[:, 0:1], annt[:, 1:2]           # (M, 1)
        b_x2, b_y2 = annt[:, 2:3], annt[:, 3:4]
        b_cls = annt[:, 4:5]
        valid = b_cls != -1.0                             # padded rows masked out

        # ---- IoU (calc_iou semantics), laid out (M, A) ----
        area = (b_x2 - b_x1) * (b_y2 - b_y1)              # (M, 1)
        iw = jnp.maximum(jnp.minimum(a_x2, b_x2) - jnp.maximum(a_x1, b_x1), 0.0)
        ih = jnp.maximum(jnp.minimum(a_y2, b_y2) - jnp.maximum(a_y1, b_y1), 0.0)
        ua = jnp.maximum(ah * aw + area - iw * ih, 1e-8)
        # exact divide here: the 0.4/0.5 thresholds below are discrete decisions
        iou = jnp.where(valid, (iw * ih) / ua, -1.0)      # (M, A); invalid never wins

        m_ann = iou.shape[0]
        iou_max = jnp.max(iou, axis=0, keepdims=True)     # (1, A)
        iota_m = lax.broadcasted_iota(jnp.int32, iou.shape, 0)
        first_max = jnp.min(jnp.where(iou == iou_max, iota_m, m_ann),
                            axis=0, keepdims=True)        # first-max (torch argmax)
        onehot = (iota_m == first_max).astype(jnp.float32)  # (M, A)

        # per-anchor annotation gather: cheap sublane multiply+reduce (M = 8 rows)
        def gather(col):                                  # (M, 1) -> (1, A)
            return jnp.sum(onehot * col, axis=0, keepdims=True)

        g_x1, g_y1 = gather(b_x1), gather(b_y1)
        g_x2, g_y2 = gather(b_x2), gather(b_y2)
        g_cls = gather(b_cls)

        pos = iou_max >= 0.5                              # (1, A)
        neg = iou_max < 0.4
        valid_t = jnp.logical_or(pos, neg)                # anchors not ignored
        pos_f = pos.astype(jnp.float32)
        num_pos = jnp.sum(pos_f, axis=1, keepdims=True)   # (1, 1)

        # ---- classification focal loss, laid out (K, A) ----
        iota_k = lax.broadcasted_iota(jnp.int32, classification.shape, 0)
        t_one = jnp.logical_and(iota_k == g_cls.astype(jnp.int32), pos)   # targets == 1

        alpha_factor = jnp.where(t_one, ALPHA, 1.0 - ALPHA)
        fw = jnp.where(t_one, 1.0 - classification, classification)
        # single-log BCE: half the EUP transcendental pushes
        bce = -jnp.log(jnp.where(t_one, classification, 1.0 - classification))
        cls_loss = jnp.where(valid_t, alpha_factor * fw * fw * bce, 0.0)
        cls_sum = jnp.sum(jnp.sum(cls_loss, axis=1, keepdims=True),
                          axis=0, keepdims=True)          # (1, 1)
        cls_total = cls_total + cls_sum * pl.reciprocal(jnp.maximum(num_pos, 1.0),
                                                        approx=True)

        # ---- regression smooth-L1 over positive anchors ----
        gw = jnp.maximum(g_x2 - g_x1, 1.0)
        gh = jnp.maximum(g_y2 - g_y1, 1.0)
        gcx = g_x1 + 0.5 * (g_x2 - g_x1)
        gcy = g_y1 + 0.5 * (g_y2 - g_y1)
        tdy = (gcy - acy) * inv_ah
        tdx = (gcx - acx) * inv_aw
        tdh = jnp.log(gh * inv_ah)
        tdw = jnp.log(gw * inv_aw)

        def smooth_l1(d):
            ad = jnp.abs(d)
            return jnp.where(ad <= 1.0 / 9.0, 0.5 * 9.0 * ad * ad, ad - 0.5 / 9.0)

        reg_elem = (smooth_l1(tdy - regression[0:1, :]) +
                    smooth_l1(tdx - regression[1:2, :]) +
                    smooth_l1(tdh - regression[2:3, :]) +
                    smooth_l1(tdw - regression[3:4, :]))   # (1, A)
        reg_sum = jnp.sum(reg_elem * pos_f, axis=1, keepdims=True)   # (1, 1)
        reg_mean = reg_sum * pl.reciprocal(jnp.maximum(4.0 * num_pos, 1.0), approx=True)
        reg_total = reg_total + jnp.where(num_pos > 0.0, reg_mean, 0.0)

    inv_b = 1.0 / batch_size
    # lane-dense (8, 128) output tiles -> unmasked stores
    cls_out_ref[...] = jnp.broadcast_to(cls_total * inv_b, cls_out_ref.shape)
    reg_out_ref[...] = jnp.broadcast_to(reg_total * inv_b, reg_out_ref.shape)


def fused_det_loss(x_t, w_all, b_all, anchors_t, annotations):
    bx, c, p = x_t.shape
    n_out = w_all.shape[0]
    a_ = anchors_t.shape[1]
    m_ = annotations.shape[1]
    kernel = functools.partial(fused_det_loss_kernel, batch_size=bx)
    cls_out, reg_out = pl.pallas_call(
        kernel,
        out_shape=(jax.ShapeDtypeStruct((8, 128), jnp.float32),
                   jax.ShapeDtypeStruct((8, 128), jnp.float32)),
        grid_spec=pltpu.PrefetchScalarGridSpec(
            num_scalar_prefetch=0, grid=(1,),
            in_specs=[pl.BlockSpec((bx, c, p), lambda i: (0, 0, 0)),
                      pl.BlockSpec((n_out, c), lambda i: (0, 0)),
                      pl.BlockSpec((n_out, 1), lambda i: (0, 0)),
                      pl.BlockSpec((4, a_), lambda i: (0, 0)),
                      pl.BlockSpec((bx, m_, 5), lambda i: (0, 0, 0))],
            out_specs=(pl.BlockSpec((8, 128), lambda i: (0, 0)),
                       pl.BlockSpec((8, 128), lambda i: (0, 0)))),
        compiler_params=pltpu.CompilerParams(dimension_semantics=("arbitrary",)),
    )(x_t, w_all, b_all, anchors_t, annotations)
    return cls_out[0, 0].reshape(1), reg_out[0, 0].reshape(1)


# ---------------------------------------------------------------------------
# Glue: anchors, params, ModelWithLoss.forward
# ---------------------------------------------------------------------------
def make_anchors(hx, wx, stride=1.0, size=4.0):
    ys = (jnp.arange(hx, dtype=jnp.float32) + 0.5) * stride
    xs = (jnp.arange(wx, dtype=jnp.float32) + 0.5) * stride
    cy, cx = jnp.meshgrid(ys, xs, indexing="ij")
    half = size / 2.0
    anc = jnp.stack([cy - half, cx - half, cy + half, cx + half], axis=0)  # (4, H, W)
    return anc.reshape(4, hx * wx)                                          # (4, A)


def init_params(key, c_in, num_classes):
    k1, k2 = jax.random.split(key, 2)
    return {
        "w_reg": 0.1 * jax.random.normal(k1, (c_in, 4), jnp.float32),
        "b_reg": jnp.zeros((1, 4), jnp.float32),
        "w_cls": 0.1 * jax.random.normal(k2, (c_in, num_classes), jnp.float32),
        "b_cls": jnp.full((1, num_classes), -2.0, jnp.float32),
    }


def model_with_loss_forward(imgs, annotations, params):
    """Equivalent of ModelWithLoss.forward(imgs, annotations) -> (cls_loss, reg_loss)."""
    bx, c, hx, wx = imgs.shape
    x_t = imgs.reshape(bx, c, hx * wx)                    # NCHW -> (B, C, P): P lane-dense
    # single combined head weight/bias: rows 0..3 regression, 4.. classification
    w_all = jnp.concatenate([params["w_reg"].T, params["w_cls"].T], axis=0)   # (4+K, C)
    b_all = jnp.concatenate([params["b_reg"], params["b_cls"]], axis=1).T     # (4+K, 1)
    anchors_t = make_anchors(hx, wx)                      # (4, A)
    return fused_det_loss(x_t, w_all, b_all, anchors_t, annotations)


# ---------------------------------------------------------------------------
# Pure-JAX reference (heads + FocalLoss) for verification
# ---------------------------------------------------------------------------
def _loss_ref_single(cls_j, reg_j, anc, ann):
    c = jnp.clip(cls_j, 1e-4, 1.0 - 1e-4)
    valid = ann[:, 4] != -1.0
    a_y1, a_x1, a_y2, a_x2 = anc[:, 0], anc[:, 1], anc[:, 2], anc[:, 3]
    b_x1, b_y1, b_x2, b_y2 = ann[:, 0], ann[:, 1], ann[:, 2], ann[:, 3]
    area = (b_x2 - b_x1) * (b_y2 - b_y1)
    iw = jnp.maximum(jnp.minimum(a_x2[:, None], b_x2[None]) - jnp.maximum(a_x1[:, None], b_x1[None]), 0.0)
    ih = jnp.maximum(jnp.minimum(a_y2[:, None], b_y2[None]) - jnp.maximum(a_y1[:, None], b_y1[None]), 0.0)
    ua = jnp.maximum((a_y2 - a_y1)[:, None] * (a_x2 - a_x1)[:, None] + area[None] - iw * ih, 1e-8)
    iou = jnp.where(valid[None], iw * ih / ua, -1.0)
    iou_max = iou.max(axis=1)
    assigned = ann[jnp.argmax(iou, axis=1)]
    pos = iou_max >= 0.5
    neg = iou_max < 0.4
    valid_t = pos | neg
    num_pos = pos.astype(jnp.float32).sum()
    k = c.shape[1]
    t_one = (jnp.arange(k)[None, :] == assigned[:, 4:5].astype(jnp.int32)) & pos[:, None]
    af = jnp.where(t_one, ALPHA, 1.0 - ALPHA)
    fw = jnp.where(t_one, 1.0 - c, c)
    bce = jnp.where(t_one, -jnp.log(c), -jnp.log(1.0 - c))
    cls_l = jnp.where(valid_t[:, None], af * fw * fw * bce, 0.0).sum() / jnp.maximum(num_pos, 1.0)
    aw, ah = a_x2 - a_x1, a_y2 - a_y1
    acx, acy = a_x1 + 0.5 * aw, a_y1 + 0.5 * ah
    gw = jnp.maximum(assigned[:, 2] - assigned[:, 0], 1.0)
    gh = jnp.maximum(assigned[:, 3] - assigned[:, 1], 1.0)
    gcx = assigned[:, 0] + 0.5 * (assigned[:, 2] - assigned[:, 0])
    gcy = assigned[:, 1] + 0.5 * (assigned[:, 3] - assigned[:, 1])
    tgt = jnp.stack([(gcy - acy) / ah, (gcx - acx) / aw, jnp.log(gh / ah), jnp.log(gw / aw)], axis=1)
    d = jnp.abs(tgt - reg_j)
    sl1 = jnp.where(d <= 1.0 / 9.0, 0.5 * 9.0 * d * d, d - 0.5 / 9.0)
    reg_l = jnp.where(num_pos > 0,
                      (sl1 * pos[:, None]).sum() / jnp.maximum(4.0 * num_pos, 1.0), 0.0)
    return cls_l, reg_l


def make_annotations(key, b, m, num_classes, img_size):
    kc, ks, kl = jax.random.split(key, 3)
    centers = jax.random.uniform(kc, (b, m, 2), minval=4.0, maxval=img_size - 4.0)
    sizes = jax.random.uniform(ks, (b, m, 2), minval=3.0, maxval=5.5)
    x1y1 = centers - sizes / 2.0
    x2y2 = centers + sizes / 2.0
    labels = jax.random.randint(kl, (b, m, 1), 0, num_classes).astype(jnp.float32)
    ann = jnp.concatenate([x1y1, x2y2, labels], axis=-1)            # (B, M, 5)
    n_valid = jnp.array([3, 2])[:, None]                            # valid boxes per image
    mask = (jnp.arange(m)[None, :] < n_valid)[..., None]
    return jnp.where(mask, ann, -1.0)


if __name__ == "__main__":
    key = jax.random.PRNGKey(0)
    k_img, k_par, k_ann = jax.random.split(key, 3)

    imgs = jax.random.normal(k_img, (B, C_IN, H, W), jnp.float32)
    params = init_params(k_par, C_IN, NUM_CLASSES)
    annotations = make_annotations(k_ann, B, MAX_ANN, NUM_CLASSES, float(H))

    cls_loss, reg_loss = jax.jit(model_with_loss_forward)(imgs, annotations, params)
    jax.block_until_ready((cls_loss, reg_loss))

    # Cross-check the fused Pallas kernel against a pure-JAX reference.
    x_flat = jnp.transpose(imgs, (0, 2, 3, 1)).reshape(B, H * W, C_IN)
    reg_all = x_flat @ params["w_reg"] + params["b_reg"]                     # (B, P, 4)
    cls_all = jax.nn.sigmoid(x_flat @ params["w_cls"] + params["b_cls"])     # (B, P, K)
    anc = make_anchors(H, W).T                                               # (A, 4)
    cls_ref, reg_ref = [], []
    for j in range(B):
        cl, rl = _loss_ref_single(cls_all[j], reg_all[j], anc, annotations[j])
        cls_ref.append(cl)
        reg_ref.append(rl)
    cls_ref = jnp.stack(cls_ref).mean(keepdims=True)
    reg_ref = jnp.stack(reg_ref).mean(keepdims=True)

    np.testing.assert_allclose(np.asarray(cls_loss), np.asarray(cls_ref), rtol=5e-3, atol=5e-3)
    np.testing.assert_allclose(np.asarray(reg_loss), np.asarray(reg_ref), rtol=5e-3, atol=5e-3)
    assert np.isfinite(np.asarray(cls_loss)).all() and np.isfinite(np.asarray(reg_loss)).all()

    print("KERNEL_OK")
</pallas_src>

<mosaic_0001>
module attributes {stable_mosaic.version = 11 : i64} {
  func.func @fused_det_loss_kernel(%arg0: i32, %arg1: memref<2x4x256xf32, #tpu.memory_space<vmem>>, %arg2: memref<12x4xf32, #tpu.memory_space<vmem>>, %arg3: memref<12x1xf32, #tpu.memory_space<vmem>>, %arg4: memref<4x256xf32, #tpu.memory_space<vmem>>, %arg5: memref<2x8x5xf32, #tpu.memory_space<vmem>>, %arg6: memref<8x128xf32, #tpu.memory_space<vmem>>, %arg7: memref<8x128xf32, #tpu.memory_space<vmem>>) attributes {dimension_semantics = [#tpu.dimension_semantics<arbitrary>], iteration_bounds = array<i64: 1>, scalar_prefetch = 0 : i64, scratch_operands = 0 : i64, tpu.core_type = #tpu.core_type<tc>, window_params = [{pipeline_mode = #tpu.pipeline_mode<synchronous>, transform_indices = @transform_0, window_bounds = array<i64: 2, 4, 256>}, {pipeline_mode = #tpu.pipeline_mode<synchronous>, transform_indices = @transform_1, window_bounds = array<i64: 12, 4>}, {pipeline_mode = #tpu.pipeline_mode<synchronous>, transform_indices = @transform_2, window_bounds = array<i64: 12, 1>}, {pipeline_mode = #tpu.pipeline_mode<synchronous>, transform_indices = @transform_3, window_bounds = array<i64: 4, 256>}, {pipeline_mode = #tpu.pipeline_mode<synchronous>, transform_indices = @transform_4, window_bounds = array<i64: 2, 8, 5>}, {pipeline_mode = #tpu.pipeline_mode<synchronous>, transform_indices = @transform_5, window_bounds = array<i64: 8, 128>}, {pipeline_mode = #tpu.pipeline_mode<synchronous>, transform_indices = @transform_6, window_bounds = array<i64: 8, 128>}]} {
    %c0 = arith.constant 0 : index
    %c0_0 = arith.constant 0 : index
    %0 = vector.load %arg4[%c0, %c0_0] : memref<4x256xf32, #tpu.memory_space<vmem>>, vector<4x256xf32>
    %1 = vector.extract_strided_slice %0 {offsets = [0, 0], sizes = [1, 256], strides = [1, 1]} : vector<4x256xf32> to vector<1x256xf32>
    %2 = vector.extract_strided_slice %0 {offsets = [1, 0], sizes = [1, 256], strides = [1, 1]} : vector<4x256xf32> to vector<1x256xf32>
    %3 = vector.extract_strided_slice %0 {offsets = [2, 0], sizes = [1, 256], strides = [1, 1]} : vector<4x256xf32> to vector<1x256xf32>
    %4 = vector.extract_strided_slice %0 {offsets = [3, 0], sizes = [1, 256], strides = [1, 1]} : vector<4x256xf32> to vector<1x256xf32>
    %5 = arith.subf %4, %2 : vector<1x256xf32>
    %6 = arith.subf %3, %1 : vector<1x256xf32>
    %7 = tpu.reciprocal %5 {approx = true} : vector<1x256xf32> -> vector<1x256xf32>
    %8 = tpu.reciprocal %6 {approx = true} : vector<1x256xf32> -> vector<1x256xf32>
    %cst = arith.constant 5.000000e-01 : f32
    %9 = vector.broadcast %cst : f32 to vector<1x256xf32>
    %10 = arith.mulf %9, %5 : vector<1x256xf32>
    %11 = arith.addf %2, %10 : vector<1x256xf32>
    %cst_1 = arith.constant 5.000000e-01 : f32
    %12 = vector.broadcast %cst_1 : f32 to vector<1x256xf32>
    %13 = arith.mulf %12, %6 : vector<1x256xf32>
    %14 = arith.addf %1, %13 : vector<1x256xf32>
    %c0_2 = arith.constant 0 : index
    %c0_3 = arith.constant 0 : index
    %15 = vector.load %arg2[%c0_2, %c0_3] : memref<12x4xf32, #tpu.memory_space<vmem>>, vector<12x4xf32>
    %c0_4 = arith.constant 0 : index
    %c0_5 = arith.constant 0 : index
    %16 = vector.load %arg3[%c0_4, %c0_5] : memref<12x1xf32, #tpu.memory_space<vmem>>, vector<12x1xf32>
    %cst_6 = arith.constant 0.000000e+00 : f32
    %17 = vector.broadcast %cst_6 : f32 to vector<1x1xf32>
    %cst_7 = arith.constant 0.000000e+00 : f32
    %18 = vector.broadcast %cst_7 : f32 to vector<1x1xf32>
    %c0_8 = arith.constant 0 : index
    %c0_9 = arith.constant 0 : index
    %c0_10 = arith.constant 0 : index
    %19 = vector.load %arg1[%c0_8, %c0_9, %c0_10] : memref<2x4x256xf32, #tpu.memory_space<vmem>>, vector<1x4x256xf32>
    %20 = vector.shape_cast %19 : vector<1x4x256xf32> to vector<4x256xf32>
    %cst_11 = arith.constant dense<0.000000e+00> : vector<12x256xf32>
    %21 = tpu.matmul %15, %20, %cst_11 {dimension_numbers = #tpu.dot_dimension_numbers<[1], [0], [0], [1], [0, 0, 1, 1], [], []>} : vector<12x4xf32>, vector<4x256xf32>, vector<12x256xf32> -> vector<12x256xf32>
    %22 = vector.broadcast %16 : vector<12x1xf32> to vector<12x256xf32>
    %23 = arith.addf %21, %22 : vector<12x256xf32>
    %24 = vector.extract_strided_slice %23 {offsets = [0, 0], sizes = [4, 256], strides = [1, 1]} : vector<12x256xf32> to vector<4x256xf32>
    %25 = vector.extract_strided_slice %23 {offsets = [4, 0], sizes = [8, 256], strides = [1, 1]} : vector<12x256xf32> to vector<8x256xf32>
    %26 = arith.negf %25 : vector<8x256xf32>
    %27 = math.exp %26 : vector<8x256xf32>
    %cst_12 = arith.constant 1.000000e+00 : f32
    %28 = vector.broadcast %cst_12 : f32 to vector<8x256xf32>
    %29 = arith.addf %28, %27 : vector<8x256xf32>
    %30 = arith.divf %28, %29 : vector<8x256xf32>
    %cst_13 = arith.constant 9.99999974E-5 : f32
    %cst_14 = arith.constant 0.999899983 : f32
    %31 = vector.broadcast %cst_13 : f32 to vector<8x256xf32>
    %32 = arith.maximumf %31, %30 : vector<8x256xf32>
    %33 = vector.broadcast %cst_14 : f32 to vector<8x256xf32>
    %34 = arith.minimumf %33, %32 : vector<8x256xf32>
    %c0_15 = arith.constant 0 : index
    %c0_16 = arith.constant 0 : index
    %c0_17 = arith.constant 0 : index
    %35 = vector.load %arg5[%c0_15, %c0_16, %c0_17] : memref<2x8x5xf32, #tpu.memory_space<vmem>>, vector<1x8x5xf32>
    %36 = vector.shape_cast %35 : vector<1x8x5xf32> to vector<8x5xf32>
    %37 = vector.extract_strided_slice %36 {offsets = [0, 0], sizes = [8, 1], strides = [1, 1]} : vector<8x5xf32> to vector<8x1xf32>
    %38 = vector.extract_strided_slice %36 {offsets = [0, 1], sizes = [8, 1], strides = [1, 1]} : vector<8x5xf32> to vector<8x1xf32>
    %39 = vector.extract_strided_slice %36 {offsets = [0, 2], sizes = [8, 1], strides = [1, 1]} : vector<8x5xf32> to vector<8x1xf32>
    %40 = vector.extract_strided_slice %36 {offsets = [0, 3], sizes = [8, 1], strides = [1, 1]} : vector<8x5xf32> to vector<8x1xf32>
    %41 = vector.extract_strided_slice %36 {offsets = [0, 4], sizes = [8, 1], strides = [1, 1]} : vector<8x5xf32> to vector<8x1xf32>
    %cst_18 = arith.constant -1.000000e+00 : f32
    %42 = vector.broadcast %cst_18 : f32 to vector<8x1xf32>
    %43 = arith.cmpf one, %41, %42 : vector<8x1xf32>
    %44 = arith.subf %39, %37 : vector<8x1xf32>
    %45 = arith.subf %40, %38 : vector<8x1xf32>
    %46 = arith.mulf %44, %45 : vector<8x1xf32>
    %47 = vector.broadcast %4 : vector<1x256xf32> to vector<8x256xf32>
    %48 = vector.broadcast %39 : vector<8x1xf32> to vector<8x256xf32>
    %49 = arith.minimumf %47, %48 : vector<8x256xf32>
    %50 = vector.broadcast %2 : vector<1x256xf32> to vector<8x256xf32>
    %51 = vector.broadcast %37 : vector<8x1xf32> to vector<8x256xf32>
    %52 = arith.maximumf %50, %51 : vector<8x256xf32>
    %53 = arith.subf %49, %52 : vector<8x256xf32>
    %cst_19 = arith.constant 0.000000e+00 : f32
    %54 = vector.broadcast %cst_19 : f32 to vector<8x256xf32>
    %55 = arith.maximumf %53, %54 : vector<8x256xf32>
    %56 = vector.broadcast %3 : vector<1x256xf32> to vector<8x256xf32>
    %57 = vector.broadcast %40 : vector<8x1xf32> to vector<8x256xf32>
    %58 = arith.minimumf %56, %57 : vector<8x256xf32>
    %59 = vector.broadcast %1 : vector<1x256xf32> to vector<8x256xf32>
    %60 = vector.broadcast %38 : vector<8x1xf32> to vector<8x256xf32>
    %61 = arith.maximumf %59, %60 : vector<8x256xf32>
    %62 = arith.subf %58, %61 : vector<8x256xf32>
    %cst_20 = arith.constant 0.000000e+00 : f32
    %63 = vector.broadcast %cst_20 : f32 to vector<8x256xf32>
    %64 = arith.maximumf %62, %63 : vector<8x256xf32>
    %65 = arith.mulf %6, %5 : vector<1x256xf32>
    %66 = vector.broadcast %65 : vector<1x256xf32> to vector<8x256xf32>
    %67 = vector.broadcast %46 : vector<8x1xf32> to vector<8x256xf32>
    %68 = arith.addf %66, %67 : vector<8x256xf32>
    %69 = arith.mulf %55, %64 : vector<8x256xf32>
    %70 = arith.subf %68, %69 : vector<8x256xf32>
    %cst_21 = arith.constant 9.99999993E-9 : f32
    %71 = vector.broadcast %cst_21 : f32 to vector<8x256xf32>
    %72 = arith.maximumf %70, %71 : vector<8x256xf32>
    %73 = arith.mulf %55, %64 : vector<8x256xf32>
    %74 = arith.divf %73, %72 : vector<8x256xf32>
    %cst_22 = arith.constant -1.000000e+00 : f32
    %75 = vector.shape_cast %43 : vector<8x1xi1> to vector<8x1xi1>
    %76 = vector.broadcast %75 : vector<8x1xi1> to vector<8x256xi1>
    %77 = vector.broadcast %cst_22 : f32 to vector<8x256xf32>
    %78 = arith.select %76, %74, %77 : vector<8x256xi1>, vector<8x256xf32>
    %cst_23 = arith.constant dense<0xFF800000> : vector<256xf32>
    %79 = vector.multi_reduction <maximumf>, %78, %cst_23 [0] : vector<8x256xf32> to vector<256xf32>
    %80 = vector.shape_cast %79 : vector<256xf32> to vector<1x256xf32>
    %81 = tpu.iota {dimensions = array<i32: 0>} : vector<8x256xi32>
    %82 = vector.broadcast %80 : vector<1x256xf32> to vector<8x256xf32>
    %83 = arith.cmpf oeq, %78, %82 : vector<8x256xf32>
    %c8_i32 = arith.constant 8 : i32
    %84 = vector.broadcast %c8_i32 : i32 to vector<8x256xi32>
    %85 = arith.select %83, %81, %84 : vector<8x256xi1>, vector<8x256xi32>
    %cst_24 = arith.constant dense<2147483647> : vector<256xi32>
    %86 = vector.multi_reduction <minsi>, %85, %cst_24 [0] : vector<8x256xi32> to vector<256xi32>
    %87 = vector.shape_cast %86 : vector<256xi32> to vector<1x256xi32>
    %88 = vector.broadcast %87 : vector<1x256xi32> to vector<8x256xi32>
    %89 = arith.cmpi eq, %81, %88 : vector<8x256xi32>
    %90 = arith.extui %89 : vector<8x256xi1> to vector<8x256xi32>
    %91 = arith.sitofp %90 : vector<8x256xi32> to vector<8x256xf32>
    %92 = vector.broadcast %37 : vector<8x1xf32> to vector<8x256xf32>
    %93 = arith.mulf %91, %92 : vector<8x256xf32>
    %cst_25 = arith.constant dense<0.000000e+00> : vector<256xf32>
    %94 = vector.multi_reduction <add>, %93, %cst_25 [0] : vector<8x256xf32> to vector<256xf32>
    %95 = vector.shape_cast %94 : vector<256xf32> to vector<1x256xf32>
    %96 = vector.broadcast %38 : vector<8x1xf32> to vector<8x256xf32>
    %97 = arith.mulf %91, %96 : vector<8x256xf32>
    %cst_26 = arith.constant dense<0.000000e+00> : vector<256xf32>
    %98 = vector.multi_reduction <add>, %97, %cst_26 [0] : vector<8x256xf32> to vector<256xf32>
    %99 = vector.shape_cast %98 : vector<256xf32> to vector<1x256xf32>
    %100 = vector.broadcast %39 : vector<8x1xf32> to vector<8x256xf32>
    %101 = arith.mulf %91, %100 : vector<8x256xf32>
    %cst_27 = arith.constant dense<0.000000e+00> : vector<256xf32>
    %102 = vector.multi_reduction <add>, %101, %cst_27 [0] : vector<8x256xf32> to vector<256xf32>
    %103 = vector.shape_cast %102 : vector<256xf32> to vector<1x256xf32>
    %104 = vector.broadcast %40 : vector<8x1xf32> to vector<8x256xf32>
    %105 = arith.mulf %91, %104 : vector<8x256xf32>
    %cst_28 = arith.constant dense<0.000000e+00> : vector<256xf32>
    %106 = vector.multi_reduction <add>, %105, %cst_28 [0] : vector<8x256xf32> to vector<256xf32>
    %107 = vector.shape_cast %106 : vector<256xf32> to vector<1x256xf32>
    %108 = vector.broadcast %41 : vector<8x1xf32> to vector<8x256xf32>
    %109 = arith.mulf %91, %108 : vector<8x256xf32>
    %cst_29 = arith.constant dense<0.000000e+00> : vector<256xf32>
    %110 = vector.multi_reduction <add>, %109, %cst_29 [0] : vector<8x256xf32> to vector<256xf32>
    %111 = vector.shape_cast %110 : vector<256xf32> to vector<1x256xf32>
    %cst_30 = arith.constant 5.000000e-01 : f32
    %112 = vector.broadcast %cst_30 : f32 to vector<1x256xf32>
    %113 = arith.cmpf oge, %80, %112 : vector<1x256xf32>
    %cst_31 = arith.constant 4.000000e-01 : f32
    %114 = vector.broadcast %cst_31 : f32 to vector<1x256xf32>
    %115 = arith.cmpf olt, %80, %114 : vector<1x256xf32>
    %116 = arith.ori %113, %115 : vector<1x256xi1>
    %117 = arith.extui %113 : vector<1x256xi1> to vector<1x256xi32>
    %118 = arith.sitofp %117 : vector<1x256xi32> to vector<1x256xf32>
    %cst_32 = arith.constant dense<0.000000e+00> : vector<1xf32>
    %119 = vector.multi_reduction <add>, %118, %cst_32 [1] : vector<1x256xf32> to vector<1xf32>
    %120 = vector.shape_cast %119 : vector<1xf32> to vector<1x1xf32>
    %121 = tpu.iota {dimensions = array<i32: 0>} : vector<8x256xi32>
    %122 = arith.fptosi %111 : vector<1x256xf32> to vector<1x256xi32>
    %123 = vector.broadcast %122 : vector<1x256xi32> to vector<8x256xi32>
    %124 = arith.cmpi eq, %121, %123 : vector<8x256xi32>
    %125 = vector.broadcast %113 : vector<1x256xi1> to vector<8x256xi1>
    %126 = arith.andi %124, %125 : vector<8x256xi1>
    %cst_33 = arith.constant 2.500000e-01 : f32
    %cst_34 = arith.constant 7.500000e-01 : f32
    %127 = vector.broadcast %cst_33 : f32 to vector<8x256xf32>
    %128 = vector.broadcast %cst_34 : f32 to vector<8x256xf32>
    %129 = arith.select %126, %127, %128 : vector<8x256xi1>, vector<8x256xf32>
    %cst_35 = arith.constant 1.000000e+00 : f32
    %130 = vector.broadcast %cst_35 : f32 to vector<8x256xf32>
    %131 = arith.subf %130, %34 : vector<8x256xf32>
    %132 = arith.select %126, %131, %34 : vector<8x256xi1>, vector<8x256xf32>
    %cst_36 = arith.constant 1.000000e+00 : f32
    %133 = vector.broadcast %cst_36 : f32 to vector<8x256xf32>
    %134 = arith.subf %133, %34 : vector<8x256xf32>
    %135 = arith.select %126, %34, %134 : vector<8x256xi1>, vector<8x256xf32>
    %136 = math.log %135 : vector<8x256xf32>
    %cst_37 = arith.constant 0.000000e+00 : f32
    %137 = vector.broadcast %cst_37 : f32 to vector<8x256xf32>
    %138 = arith.subf %137, %136 : vector<8x256xf32>
    %139 = arith.mulf %129, %132 : vector<8x256xf32>
    %140 = arith.mulf %139, %132 : vector<8x256xf32>
    %141 = arith.mulf %140, %138 : vector<8x256xf32>
    %cst_38 = arith.constant 0.000000e+00 : f32
    %142 = vector.shape_cast %116 : vector<1x256xi1> to vector<1x256xi1>
    %143 = vector.broadcast %142 : vector<1x256xi1> to vector<8x256xi1>
    %144 = vector.broadcast %cst_38 : f32 to vector<8x256xf32>
    %145 = arith.select %143, %141, %144 : vector<8x256xi1>, vector<8x256xf32>
    %cst_39 = arith.constant dense<0.000000e+00> : vector<8xf32>
    %146 = vector.multi_reduction <add>, %145, %cst_39 [1] : vector<8x256xf32> to vector<8xf32>
    %147 = vector.shape_cast %146 : vector<8xf32> to vector<8x1xf32>
    %cst_40 = arith.constant dense<0.000000e+00> : vector<1xf32>
    %148 = vector.multi_reduction <add>, %147, %cst_40 [0] : vector<8x1xf32> to vector<1xf32>
    %149 = vector.shape_cast %148 : vector<1xf32> to vector<1x1xf32>
    %cst_41 = arith.constant 1.000000e+00 : f32
    %150 = vector.broadcast %cst_41 : f32 to vector<1x1xf32>
    %151 = arith.maximumf %120, %150 : vector<1x1xf32>
    %152 = tpu.reciprocal %151 {approx = true} : vector<1x1xf32> -> vector<1x1xf32>
    %153 = arith.mulf %149, %152 : vector<1x1xf32>
    %154 = arith.addf %17, %153 : vector<1x1xf32>
    %155 = arith.subf %103, %95 : vector<1x256xf32>
    %cst_42 = arith.constant 1.000000e+00 : f32
    %156 = vector.broadcast %cst_42 : f32 to vector<1x256xf32>
    %157 = arith.maximumf %155, %156 : vector<1x256xf32>
    %158 = arith.subf %107, %99 : vector<1x256xf32>
    %cst_43 = arith.constant 1.000000e+00 : f32
    %159 = vector.broadcast %cst_43 : f32 to vector<1x256xf32>
    %160 = arith.maximumf %158, %159 : vector<1x256xf32>
    %161 = arith.subf %103, %95 : vector<1x256xf32>
    %cst_44 = arith.constant 5.000000e-01 : f32
    %162 = vector.broadcast %cst_44 : f32 to vector<1x256xf32>
    %163 = arith.mulf %162, %161 : vector<1x256xf32>
    %164 = arith.addf %95, %163 : vector<1x256xf32>
    %165 = arith.subf %107, %99 : vector<1x256xf32>
    %cst_45 = arith.constant 5.000000e-01 : f32
    %166 = vector.broadcast %cst_45 : f32 to vector<1x256xf32>
    %167 = arith.mulf %166, %165 : vector<1x256xf32>
    %168 = arith.addf %99, %167 : vector<1x256xf32>
    %169 = arith.subf %168, %14 : vector<1x256xf32>
    %170 = arith.mulf %169, %8 : vector<1x256xf32>
    %171 = arith.subf %164, %11 : vector<1x256xf32>
    %172 = arith.mulf %171, %7 : vector<1x256xf32>
    %173 = arith.mulf %160, %8 : vector<1x256xf32>
    %174 = math.log %173 : vector<1x256xf32>
    %175 = arith.mulf %157, %7 : vector<1x256xf32>
    %176 = math.log %175 : vector<1x256xf32>
    %177 = vector.extract_strided_slice %24 {offsets = [0, 0], sizes = [1, 256], strides = [1, 1]} : vector<4x256xf32> to vector<1x256xf32>
    %178 = arith.subf %170, %177 : vector<1x256xf32>
    %179 = math.absf %178 : vector<1x256xf32>
    %cst_46 = arith.constant 0.111111112 : f32
    %180 = vector.broadcast %cst_46 : f32 to vector<1x256xf32>
    %181 = arith.cmpf ole, %179, %180 : vector<1x256xf32>
    %cst_47 = arith.constant 4.500000e+00 : f32
    %182 = vector.broadcast %cst_47 : f32 to vector<1x256xf32>
    %183 = arith.mulf %182, %179 : vector<1x256xf32>
    %184 = arith.mulf %183, %179 : vector<1x256xf32>
    %cst_48 = arith.constant 0.055555556 : f32
    %185 = vector.broadcast %cst_48 : f32 to vector<1x256xf32>
    %186 = arith.subf %179, %185 : vector<1x256xf32>
    %187 = arith.select %181, %184, %186 : vector<1x256xi1>, vector<1x256xf32>
    %188 = vector.extract_strided_slice %24 {offsets = [1, 0], sizes = [1, 256], strides = [1, 1]} : vector<4x256xf32> to vector<1x256xf32>
    %189 = arith.subf %172, %188 : vector<1x256xf32>
    %190 = math.absf %189 : vector<1x256xf32>
    %cst_49 = arith.constant 0.111111112 : f32
    %191 = vector.broadcast %cst_49 : f32 to vector<1x256xf32>
    %192 = arith.cmpf ole, %190, %191 : vector<1x256xf32>
    %cst_50 = arith.constant 4.500000e+00 : f32
    %193 = vector.broadcast %cst_50 : f32 to vector<1x256xf32>
    %194 = arith.mulf %193, %190 : vector<1x256xf32>
    %195 = arith.mulf %194, %190 : vector<1x256xf32>
    %cst_51 = arith.constant 0.055555556 : f32
    %196 = vector.broadcast %cst_51 : f32 to vector<1x256xf32>
    %197 = arith.subf %190, %196 : vector<1x256xf32>
    %198 = arith.select %192, %195, %197 : vector<1x256xi1>, vector<1x256xf32>
    %199 = arith.addf %187, %198 : vector<1x256xf32>
    %200 = vector.extract_strided_slice %24 {offsets = [2, 0], sizes = [1, 256], strides = [1, 1]} : vector<4x256xf32> to vector<1x256xf32>
    %201 = arith.subf %174, %200 : vector<1x256xf32>
    %202 = math.absf %201 : vector<1x256xf32>
    %cst_52 = arith.constant 0.111111112 : f32
    %203 = vector.broadcast %cst_52 : f32 to vector<1x256xf32>
    %204 = arith.cmpf ole, %202, %203 : vector<1x256xf32>
    %cst_53 = arith.constant 4.500000e+00 : f32
    %205 = vector.broadcast %cst_53 : f32 to vector<1x256xf32>
    %206 = arith.mulf %205, %202 : vector<1x256xf32>
    %207 = arith.mulf %206, %202 : vector<1x256xf32>
    %cst_54 = arith.constant 0.055555556 : f32
    %208 = vector.broadcast %cst_54 : f32 to vector<1x256xf32>
    %209 = arith.subf %202, %208 : vector<1x256xf32>
    %210 = arith.select %204, %207, %209 : vector<1x256xi1>, vector<1x256xf32>
    %211 = arith.addf %199, %210 : vector<1x256xf32>
    %212 = vector.extract_strided_slice %24 {offsets = [3, 0], sizes = [1, 256], strides = [1, 1]} : vector<4x256xf32> to vector<1x256xf32>
    %213 = arith.subf %176, %212 : vector<1x256xf32>
    %214 = math.absf %213 : vector<1x256xf32>
    %cst_55 = arith.constant 0.111111112 : f32
    %215 = vector.broadcast %cst_55 : f32 to vector<1x256xf32>
    %216 = arith.cmpf ole, %214, %215 : vector<1x256xf32>
    %cst_56 = arith.constant 4.500000e+00 : f32
    %217 = vector.broadcast %cst_56 : f32 to vector<1x256xf32>
    %218 = arith.mulf %217, %214 : vector<1x256xf32>
    %219 = arith.mulf %218, %214 : vector<1x256xf32>
    %cst_57 = arith.constant 0.055555556 : f32
    %220 = vector.broadcast %cst_57 : f32 to vector<1x256xf32>
    %221 = arith.subf %214, %220 : vector<1x256xf32>
    %222 = arith.select %216, %219, %221 : vector<1x256xi1>, vector<1x256xf32>
    %223 = arith.addf %211, %222 : vector<1x256xf32>
    %224 = arith.mulf %223, %118 : vector<1x256xf32>
    %cst_58 = arith.constant dense<0.000000e+00> : vector<1xf32>
    %225 = vector.multi_reduction <add>, %224, %cst_58 [1] : vector<1x256xf32> to vector<1xf32>
    %226 = vector.shape_cast %225 : vector<1xf32> to vector<1x1xf32>
    %cst_59 = arith.constant 4.000000e+00 : f32
    %227 = vector.broadcast %cst_59 : f32 to vector<1x1xf32>
    %228 = arith.mulf %227, %120 : vector<1x1xf32>
    %cst_60 = arith.constant 1.000000e+00 : f32
    %229 = vector.broadcast %cst_60 : f32 to vector<1x1xf32>
    %230 = arith.maximumf %228, %229 : vector<1x1xf32>
    %231 = tpu.reciprocal %230 {approx = true} : vector<1x1xf32> -> vector<1x1xf32>
    %232 = arith.mulf %226, %231 : vector<1x1xf32>
    %cst_61 = arith.constant 0.000000e+00 : f32
    %233 = vector.broadcast %cst_61 : f32 to vector<1x1xf32>
    %234 = arith.cmpf ogt, %120, %233 : vector<1x1xf32>
    %cst_62 = arith.constant 0.000000e+00 : f32
    %235 = vector.broadcast %cst_62 : f32 to vector<1x1xf32>
    %236 = arith.select %234, %232, %235 : vector<1x1xi1>, vector<1x1xf32>
    %237 = arith.addf %18, %236 : vector<1x1xf32>
    %c1 = arith.constant 1 : index
    %c0_63 = arith.constant 0 : index
    %c0_64 = arith.constant 0 : index
    %238 = vector.load %arg1[%c1, %c0_63, %c0_64] : memref<2x4x256xf32, #tpu.memory_space<vmem>>, vector<1x4x256xf32>
    %239 = vector.shape_cast %238 : vector<1x4x256xf32> to vector<4x256xf32>
    %cst_65 = arith.constant dense<0.000000e+00> : vector<12x256xf32>
    %240 = tpu.matmul %15, %239, %cst_65 {dimension_numbers = #tpu.dot_dimension_numbers<[1], [0], [0], [1], [0, 0, 1, 1], [], []>} : vector<12x4xf32>, vector<4x256xf32>, vector<12x256xf32> -> vector<12x256xf32>
    %241 = vector.broadcast %16 : vector<12x1xf32> to vector<12x256xf32>
    %242 = arith.addf %240, %241 : vector<12x256xf32>
    %243 = vector.extract_strided_slice %242 {offsets = [0, 0], sizes = [4, 256], strides = [1, 1]} : vector<12x256xf32> to vector<4x256xf32>
    %244 = vector.extract_strided_slice %242 {offsets = [4, 0], sizes = [8, 256], strides = [1, 1]} : vector<12x256xf32> to vector<8x256xf32>
    %245 = arith.negf %244 : vector<8x256xf32>
    %246 = math.exp %245 : vector<8x256xf32>
    %cst_66 = arith.constant 1.000000e+00 : f32
    %247 = vector.broadcast %cst_66 : f32 to vector<8x256xf32>
    %248 = arith.addf %247, %246 : vector<8x256xf32>
    %249 = arith.divf %247, %248 : vector<8x256xf32>
    %cst_67 = arith.constant 9.99999974E-5 : f32
    %cst_68 = arith.constant 0.999899983 : f32
    %250 = vector.broadcast %cst_67 : f32 to vector<8x256xf32>
    %251 = arith.maximumf %250, %249 : vector<8x256xf32>
    %252 = vector.broadcast %cst_68 : f32 to vector<8x256xf32>
    %253 = arith.minimumf %252, %251 : vector<8x256xf32>
    %c1_69 = arith.constant 1 : index
    %c0_70 = arith.constant 0 : index
    %c0_71 = arith.constant 0 : index
    %254 = vector.load %arg5[%c1_69, %c0_70, %c0_71] : memref<2x8x5xf32, #tpu.memory_space<vmem>>, vector<1x8x5xf32>
    %255 = vector.shape_cast %254 : vector<1x8x5xf32> to vector<8x5xf32>
    %256 = vector.extract_strided_slice %255 {offsets = [0, 0], sizes = [8, 1], strides = [1, 1]} : vector<8x5xf32> to vector<8x1xf32>
    %257 = vector.extract_strided_slice %255 {offsets = [0, 1], sizes = [8, 1], strides = [1, 1]} : vector<8x5xf32> to vector<8x1xf32>
    %258 = vector.extract_strided_slice %255 {offsets = [0, 2], sizes = [8, 1], strides = [1, 1]} : vector<8x5xf32> to vector<8x1xf32>
    %259 = vector.extract_strided_slice %255 {offsets = [0, 3], sizes = [8, 1], strides = [1, 1]} : vector<8x5xf32> to vector<8x1xf32>
    %260 = vector.extract_strided_slice %255 {offsets = [0, 4], sizes = [8, 1], strides = [1, 1]} : vector<8x5xf32> to vector<8x1xf32>
    %cst_72 = arith.constant -1.000000e+00 : f32
    %261 = vector.broadcast %cst_72 : f32 to vector<8x1xf32>
    %262 = arith.cmpf one, %260, %261 : vector<8x1xf32>
    %263 = arith.subf %258, %256 : vector<8x1xf32>
    %264 = arith.subf %259, %257 : vector<8x1xf32>
    %265 = arith.mulf %263, %264 : vector<8x1xf32>
    %266 = vector.broadcast %4 : vector<1x256xf32> to vector<8x256xf32>
    %267 = vector.broadcast %258 : vector<8x1xf32> to vector<8x256xf32>
    %268 = arith.minimumf %266, %267 : vector<8x256xf32>
    %269 = vector.broadcast %2 : vector<1x256xf32> to vector<8x256xf32>
    %270 = vector.broadcast %256 : vector<8x1xf32> to vector<8x256xf32>
    %271 = arith.maximumf %269, %270 : vector<8x256xf32>
    %272 = arith.subf %268, %271 : vector<8x256xf32>
    %cst_73 = arith.constant 0.000000e+00 : f32
    %273 = vector.broadcast %cst_73 : f32 to vector<8x256xf32>
    %274 = arith.maximumf %272, %273 : vector<8x256xf32>
    %275 = vector.broadcast %3 : vector<1x256xf32> to vector<8x256xf32>
    %276 = vector.broadcast %259 : vector<8x1xf32> to vector<8x256xf32>
    %277 = arith.minimumf %275, %276 : vector<8x256xf32>
    %278 = vector.broadcast %1 : vector<1x256xf32> to vector<8x256xf32>
    %279 = vector.broadcast %257 : vector<8x1xf32> to vector<8x256xf32>
    %280 = arith.maximumf %278, %279 : vector<8x256xf32>
    %281 = arith.subf %277, %280 : vector<8x256xf32>
    %cst_74 = arith.constant 0.000000e+00 : f32
    %282 = vector.broadcast %cst_74 : f32 to vector<8x256xf32>
    %283 = arith.maximumf %281, %282 : vector<8x256xf32>
    %284 = arith.mulf %6, %5 : vector<1x256xf32>
    %285 = vector.broadcast %284 : vector<1x256xf32> to vector<8x256xf32>
    %286 = vector.broadcast %265 : vector<8x1xf32> to vector<8x256xf32>
    %287 = arith.addf %285, %286 : vector<8x256xf32>
    %288 = arith.mulf %274, %283 : vector<8x256xf32>
    %289 = arith.subf %287, %288 : vector<8x256xf32>
    %cst_75 = arith.constant 9.99999993E-9 : f32
    %290 = vector.broadcast %cst_75 : f32 to vector<8x256xf32>
    %291 = arith.maximumf %289, %290 : vector<8x256xf32>
    %292 = arith.mulf %274, %283 : vector<8x256xf32>
    %293 = arith.divf %292, %291 : vector<8x256xf32>
    %cst_76 = arith.constant -1.000000e+00 : f32
    %294 = vector.shape_cast %262 : vector<8x1xi1> to vector<8x1xi1>
    %295 = vector.broadcast %294 : vector<8x1xi1> to vector<8x256xi1>
    %296 = vector.broadcast %cst_76 : f32 to vector<8x256xf32>
    %297 = arith.select %295, %293, %296 : vector<8x256xi1>, vector<8x256xf32>
    %cst_77 = arith.constant dense<0xFF800000> : vector<256xf32>
    %298 = vector.multi_reduction <maximumf>, %297, %cst_77 [0] : vector<8x256xf32> to vector<256xf32>
    %299 = vector.shape_cast %298 : vector<256xf32> to vector<1x256xf32>
    %300 = tpu.iota {dimensions = array<i32: 0>} : vector<8x256xi32>
    %301 = vector.broadcast %299 : vector<1x256xf32> to vector<8x256xf32>
    %302 = arith.cmpf oeq, %297, %301 : vector<8x256xf32>
    %c8_i32_78 = arith.constant 8 : i32
    %303 = vector.broadcast %c8_i32_78 : i32 to vector<8x256xi32>
    %304 = arith.select %302, %300, %303 : vector<8x256xi1>, vector<8x256xi32>
    %cst_79 = arith.constant dense<2147483647> : vector<256xi32>
    %305 = vector.multi_reduction <minsi>, %304, %cst_79 [0] : vector<8x256xi32> to vector<256xi32>
    %306 = vector.shape_cast %305 : vector<256xi32> to vector<1x256xi32>
    %307 = vector.broadcast %306 : vector<1x256xi32> to vector<8x256xi32>
    %308 = arith.cmpi eq, %300, %307 : vector<8x256xi32>
    %309 = arith.extui %308 : vector<8x256xi1> to vector<8x256xi32>
    %310 = arith.sitofp %309 : vector<8x256xi32> to vector<8x256xf32>
    %311 = vector.broadcast %256 : vector<8x1xf32> to vector<8x256xf32>
    %312 = arith.mulf %310, %311 : vector<8x256xf32>
    %cst_80 = arith.constant dense<0.000000e+00> : vector<256xf32>
    %313 = vector.multi_reduction <add>, %312, %cst_80 [0] : vector<8x256xf32> to vector<256xf32>
    %314 = vector.shape_cast %313 : vector<256xf32> to vector<1x256xf32>
    %315 = vector.broadcast %257 : vector<8x1xf32> to vector<8x256xf32>
    %316 = arith.mulf %310, %315 : vector<8x256xf32>
    %cst_81 = arith.constant dense<0.000000e+00> : vector<256xf32>
    %317 = vector.multi_reduction <add>, %316, %cst_81 [0] : vector<8x256xf32> to vector<256xf32>
    %318 = vector.shape_cast %317 : vector<256xf32> to vector<1x256xf32>
    %319 = vector.broadcast %258 : vector<8x1xf32> to vector<8x256xf32>
    %320 = arith.mulf %310, %319 : vector<8x256xf32>
    %cst_82 = arith.constant dense<0.000000e+00> : vector<256xf32>
    %321 = vector.multi_reduction <add>, %320, %cst_82 [0] : vector<8x256xf32> to vector<256xf32>
    %322 = vector.shape_cast %321 : vector<256xf32> to vector<1x256xf32>
    %323 = vector.broadcast %259 : vector<8x1xf32> to vector<8x256xf32>
    %324 = arith.mulf %310, %323 : vector<8x256xf32>
    %cst_83 = arith.constant dense<0.000000e+00> : vector<256xf32>
    %325 = vector.multi_reduction <add>, %324, %cst_83 [0] : vector<8x256xf32> to vector<256xf32>
    %326 = vector.shape_cast %325 : vector<256xf32> to vector<1x256xf32>
    %327 = vector.broadcast %260 : vector<8x1xf32> to vector<8x256xf32>
    %328 = arith.mulf %310, %327 : vector<8x256xf32>
    %cst_84 = arith.constant dense<0.000000e+00> : vector<256xf32>
    %329 = vector.multi_reduction <add>, %328, %cst_84 [0] : vector<8x256xf32> to vector<256xf32>
    %330 = vector.shape_cast %329 : vector<256xf32> to vector<1x256xf32>
    %cst_85 = arith.constant 5.000000e-01 : f32
    %331 = vector.broadcast %cst_85 : f32 to vector<1x256xf32>
    %332 = arith.cmpf oge, %299, %331 : vector<1x256xf32>
    %cst_86 = arith.constant 4.000000e-01 : f32
    %333 = vector.broadcast %cst_86 : f32 to vector<1x256xf32>
    %334 = arith.cmpf olt, %299, %333 : vector<1x256xf32>
    %335 = arith.ori %332, %334 : vector<1x256xi1>
    %336 = arith.extui %332 : vector<1x256xi1> to vector<1x256xi32>
    %337 = arith.sitofp %336 : vector<1x256xi32> to vector<1x256xf32>
    %cst_87 = arith.constant dense<0.000000e+00> : vector<1xf32>
    %338 = vector.multi_reduction <add>, %337, %cst_87 [1] : vector<1x256xf32> to vector<1xf32>
    %339 = vector.shape_cast %338 : vector<1xf32> to vector<1x1xf32>
    %340 = tpu.iota {dimensions = array<i32: 0>} : vector<8x256xi32>
    %341 = arith.fptosi %330 : vector<1x256xf32> to vector<1x256xi32>
    %342 = vector.broadcast %341 : vector<1x256xi32> to vector<8x256xi32>
    %343 = arith.cmpi eq, %340, %342 : vector<8x256xi32>
    %344 = vector.broadcast %332 : vector<1x256xi1> to vector<8x256xi1>
    %345 = arith.andi %343, %344 : vector<8x256xi1>
    %cst_88 = arith.constant 2.500000e-01 : f32
    %cst_89 = arith.constant 7.500000e-01 : f32
    %346 = vector.broadcast %cst_88 : f32 to vector<8x256xf32>
    %347 = vector.broadcast %cst_89 : f32 to vector<8x256xf32>
    %348 = arith.select %345, %346, %347 : vector<8x256xi1>, vector<8x256xf32>
    %cst_90 = arith.constant 1.000000e+00 : f32
    %349 = vector.broadcast %cst_90 : f32 to vector<8x256xf32>
    %350 = arith.subf %349, %253 : vector<8x256xf32>
    %351 = arith.select %345, %350, %253 : vector<8x256xi1>, vector<8x256xf32>
    %cst_91 = arith.constant 1.000000e+00 : f32
    %352 = vector.broadcast %cst_91 : f32 to vector<8x256xf32>
    %353 = arith.subf %352, %253 : vector<8x256xf32>
    %354 = arith.select %345, %253, %353 : vector<8x256xi1>, vector<8x256xf32>
    %355 = math.log %354 : vector<8x256xf32>
    %cst_92 = arith.constant 0.000000e+00 : f32
    %356 = vector.broadcast %cst_92 : f32 to vector<8x256xf32>
    %357 = arith.subf %356, %355 : vector<8x256xf32>
    %358 = arith.mulf %348, %351 : vector<8x256xf32>
    %359 = arith.mulf %358, %351 : vector<8x256xf32>
    %360 = arith.mulf %359, %357 : vector<8x256xf32>
    %cst_93 = arith.constant 0.000000e+00 : f32
    %361 = vector.shape_cast %335 : vector<1x256xi1> to vector<1x256xi1>
    %362 = vector.broadcast %361 : vector<1x256xi1> to vector<8x256xi1>
    %363 = vector.broadcast %cst_93 : f32 to vector<8x256xf32>
    %364 = arith.select %362, %360, %363 : vector<8x256xi1>, vector<8x256xf32>
    %cst_94 = arith.constant dense<0.000000e+00> : vector<8xf32>
    %365 = vector.multi_reduction <add>, %364, %cst_94 [1] : vector<8x256xf32> to vector<8xf32>
    %366 = vector.shape_cast %365 : vector<8xf32> to vector<8x1xf32>
    %cst_95 = arith.constant dense<0.000000e+00> : vector<1xf32>
    %367 = vector.multi_reduction <add>, %366, %cst_95 [0] : vector<8x1xf32> to vector<1xf32>
    %368 = vector.shape_cast %367 : vector<1xf32> to vector<1x1xf32>
    %cst_96 = arith.constant 1.000000e+00 : f32
    %369 = vector.broadcast %cst_96 : f32 to vector<1x1xf32>
    %370 = arith.maximumf %339, %369 : vector<1x1xf32>
    %371 = tpu.reciprocal %370 {approx = true} : vector<1x1xf32> -> vector<1x1xf32>
    %372 = arith.mulf %368, %371 : vector<1x1xf32>
    %373 = arith.addf %154, %372 : vector<1x1xf32>
    %374 = arith.subf %322, %314 : vector<1x256xf32>
    %cst_97 = arith.constant 1.000000e+00 : f32
    %375 = vector.broadcast %cst_97 : f32 to vector<1x256xf32>
    %376 = arith.maximumf %374, %375 : vector<1x256xf32>
    %377 = arith.subf %326, %318 : vector<1x256xf32>
    %cst_98 = arith.constant 1.000000e+00 : f32
    %378 = vector.broadcast %cst_98 : f32 to vector<1x256xf32>
    %379 = arith.maximumf %377, %378 : vector<1x256xf32>
    %380 = arith.subf %322, %314 : vector<1x256xf32>
    %cst_99 = arith.constant 5.000000e-01 : f32
    %381 = vector.broadcast %cst_99 : f32 to vector<1x256xf32>
    %382 = arith.mulf %381, %380 : vector<1x256xf32>
    %383 = arith.addf %314, %382 : vector<1x256xf32>
    %384 = arith.subf %326, %318 : vector<1x256xf32>
    %cst_100 = arith.constant 5.000000e-01 : f32
    %385 = vector.broadcast %cst_100 : f32 to vector<1x256xf32>
    %386 = arith.mulf %385, %384 : vector<1x256xf32>
    %387 = arith.addf %318, %386 : vector<1x256xf32>
    %388 = arith.subf %387, %14 : vector<1x256xf32>
    %389 = arith.mulf %388, %8 : vector<1x256xf32>
    %390 = arith.subf %383, %11 : vector<1x256xf32>
    %391 = arith.mulf %390, %7 : vector<1x256xf32>
    %392 = arith.mulf %379, %8 : vector<1x256xf32>
    %393 = math.log %392 : vector<1x256xf32>
    %394 = arith.mulf %376, %7 : vector<1x256xf32>
    %395 = math.log %394 : vector<1x256xf32>
    %396 = vector.extract_strided_slice %243 {offsets = [0, 0], sizes = [1, 256], strides = [1, 1]} : vector<4x256xf32> to vector<1x256xf32>
    %397 = arith.subf %389, %396 : vector<1x256xf32>
    %398 = math.absf %397 : vector<1x256xf32>
    %cst_101 = arith.constant 0.111111112 : f32
    %399 = vector.broadcast %cst_101 : f32 to vector<1x256xf32>
    %400 = arith.cmpf ole, %398, %399 : vector<1x256xf32>
    %cst_102 = arith.constant 4.500000e+00 : f32
    %401 = vector.broadcast %cst_102 : f32 to vector<1x256xf32>
    %402 = arith.mulf %401, %398 : vector<1x256xf32>
    %403 = arith.mulf %402, %398 : vector<1x256xf32>
    %cst_103 = arith.constant 0.055555556 : f32
    %404 = vector.broadcast %cst_103 : f32 to vector<1x256xf32>
    %405 = arith.subf %398, %404 : vector<1x256xf32>
    %406 = arith.select %400, %403, %405 : vector<1x256xi1>, vector<1x256xf32>
    %407 = vector.extract_strided_slice %243 {offsets = [1, 0], sizes = [1, 256], strides = [1, 1]} : vector<4x256xf32> to vector<1x256xf32>
    %408 = arith.subf %391, %407 : vector<1x256xf32>
    %409 = math.absf %408 : vector<1x256xf32>
    %cst_104 = arith.constant 0.111111112 : f32
    %410 = vector.broadcast %cst_104 : f32 to vector<1x256xf32>
    %411 = arith.cmpf ole, %409, %410 : vector<1x256xf32>
    %cst_105 = arith.constant 4.500000e+00 : f32
    %412 = vector.broadcast %cst_105 : f32 to vector<1x256xf32>
    %413 = arith.mulf %412, %409 : vector<1x256xf32>
    %414 = arith.mulf %413, %409 : vector<1x256xf32>
    %cst_106 = arith.constant 0.055555556 : f32
    %415 = vector.broadcast %cst_106 : f32 to vector<1x256xf32>
    %416 = arith.subf %409, %415 : vector<1x256xf32>
    %417 = arith.select %411, %414, %416 : vector<1x256xi1>, vector<1x256xf32>
    %418 = arith.addf %406, %417 : vector<1x256xf32>
    %419 = vector.extract_strided_slice %243 {offsets = [2, 0], sizes = [1, 256], strides = [1, 1]} : vector<4x256xf32> to vector<1x256xf32>
    %420 = arith.subf %393, %419 : vector<1x256xf32>
    %421 = math.absf %420 : vector<1x256xf32>
    %cst_107 = arith.constant 0.111111112 : f32
    %422 = vector.broadcast %cst_107 : f32 to vector<1x256xf32>
    %423 = arith.cmpf ole, %421, %422 : vector<1x256xf32>
    %cst_108 = arith.constant 4.500000e+00 : f32
    %424 = vector.broadcast %cst_108 : f32 to vector<1x256xf32>
    %425 = arith.mulf %424, %421 : vector<1x256xf32>
    %426 = arith.mulf %425, %421 : vector<1x256xf32>
    %cst_109 = arith.constant 0.055555556 : f32
    %427 = vector.broadcast %cst_109 : f32 to vector<1x256xf32>
    %428 = arith.subf %421, %427 : vector<1x256xf32>
    %429 = arith.select %423, %426, %428 : vector<1x256xi1>, vector<1x256xf32>
    %430 = arith.addf %418, %429 : vector<1x256xf32>
    %431 = vector.extract_strided_slice %243 {offsets = [3, 0], sizes = [1, 256], strides = [1, 1]} : vector<4x256xf32> to vector<1x256xf32>
    %432 = arith.subf %395, %431 : vector<1x256xf32>
    %433 = math.absf %432 : vector<1x256xf32>
    %cst_110 = arith.constant 0.111111112 : f32
    %434 = vector.broadcast %cst_110 : f32 to vector<1x256xf32>
    %435 = arith.cmpf ole, %433, %434 : vector<1x256xf32>
    %cst_111 = arith.constant 4.500000e+00 : f32
    %436 = vector.broadcast %cst_111 : f32 to vector<1x256xf32>
    %437 = arith.mulf %436, %433 : vector<1x256xf32>
    %438 = arith.mulf %437, %433 : vector<1x256xf32>
    %cst_112 = arith.constant 0.055555556 : f32
    %439 = vector.broadcast %cst_112 : f32 to vector<1x256xf32>
    %440 = arith.subf %433, %439 : vector<1x256xf32>
    %441 = arith.select %435, %438, %440 : vector<1x256xi1>, vector<1x256xf32>
    %442 = arith.addf %430, %441 : vector<1x256xf32>
    %443 = arith.mulf %442, %337 : vector<1x256xf32>
    %cst_113 = arith.constant dense<0.000000e+00> : vector<1xf32>
    %444 = vector.multi_reduction <add>, %443, %cst_113 [1] : vector<1x256xf32> to vector<1xf32>
    %445 = vector.shape_cast %444 : vector<1xf32> to vector<1x1xf32>
    %cst_114 = arith.constant 4.000000e+00 : f32
    %446 = vector.broadcast %cst_114 : f32 to vector<1x1xf32>
    %447 = arith.mulf %446, %339 : vector<1x1xf32>
    %cst_115 = arith.constant 1.000000e+00 : f32
    %448 = vector.broadcast %cst_115 : f32 to vector<1x1xf32>
    %449 = arith.maximumf %447, %448 : vector<1x1xf32>
    %450 = tpu.reciprocal %449 {approx = true} : vector<1x1xf32> -> vector<1x1xf32>
    %451 = arith.mulf %445, %450 : vector<1x1xf32>
    %cst_116 = arith.constant 0.000000e+00 : f32
    %452 = vector.broadcast %cst_116 : f32 to vector<1x1xf32>
    %453 = arith.cmpf ogt, %339, %452 : vector<1x1xf32>
    %cst_117 = arith.constant 0.000000e+00 : f32
    %454 = vector.broadcast %cst_117 : f32 to vector<1x1xf32>
    %455 = arith.select %453, %451, %454 : vector<1x1xi1>, vector<1x1xf32>
    %456 = arith.addf %237, %455 : vector<1x1xf32>
    %cst_118 = arith.constant 5.000000e-01 : f32
    %457 = vector.broadcast %cst_118 : f32 to vector<1x1xf32>
    %458 = arith.mulf %373, %457 : vector<1x1xf32>
    %459 = vector.shape_cast %458 : vector<1x1xf32> to vector<1x1xf32>
    %460 = vector.broadcast %459 : vector<1x1xf32> to vector<8x128xf32>
    %c0_119 = arith.constant 0 : index
    %c0_120 = arith.constant 0 : index
    %461 = vector.load %arg6[%c0_119, %c0_120] : memref<8x128xf32, #tpu.memory_space<vmem>>, vector<8x128xf32>
    tpu.vector_store %arg6[%c0_119, %c0_120], %460 {strides = array<i32>} : memref<8x128xf32, #tpu.memory_space<vmem>>, vector<8x128xf32>,
    %cst_121 = arith.constant 5.000000e-01 : f32
    %462 = vector.broadcast %cst_121 : f32 to vector<1x1xf32>
    %463 = arith.mulf %456, %462 : vector<1x1xf32>
    %464 = vector.shape_cast %463 : vector<1x1xf32> to vector<1x1xf32>
    %465 = vector.broadcast %464 : vector<1x1xf32> to vector<8x128xf32>
    %c0_122 = arith.constant 0 : index
    %c0_123 = arith.constant 0 : index
    %466 = vector.load %arg7[%c0_122, %c0_123] : memref<8x128xf32, #tpu.memory_space<vmem>>, vector<8x128xf32>
    tpu.vector_store %arg7[%c0_122, %c0_123], %465 {strides = array<i32>} : memref<8x128xf32, #tpu.memory_space<vmem>>, vector<8x128xf32>,
    return
  }
  func.func @transform_0(%arg0: i32) -> (i32, i32, i32) {
    %c0_i32 = arith.constant 0 : i32
    %c0_i32_0 = arith.constant 0 : i32
    %c0_i32_1 = arith.constant 0 : i32
    %c0_i32_2 = arith.constant 0 : i32
    return %c0_i32, %c0_i32_0, %c0_i32_1 : i32, i32, i32
  }
  func.func @transform_1(%arg0: i32) -> (i32, i32) {
    %c0_i32 = arith.constant 0 : i32
    %c0_i32_0 = arith.constant 0 : i32
    %c0_i32_1 = arith.constant 0 : i32
    return %c0_i32, %c0_i32_0 : i32, i32
  }
  func.func @transform_2(%arg0: i32) -> (i32, i32) {
    %c0_i32 = arith.constant 0 : i32
    %c0_i32_0 = arith.constant 0 : i32
    %c0_i32_1 = arith.constant 0 : i32
    return %c0_i32, %c0_i32_0 : i32, i32
  }
  func.func @transform_3(%arg0: i32) -> (i32, i32) {
    %c0_i32 = arith.constant 0 : i32
    %c0_i32_0 = arith.constant 0 : i32
    %c0_i32_1 = arith.constant 0 : i32
    return %c0_i32, %c0_i32_0 : i32, i32
  }
  func.func @transform_4(%arg0: i32) -> (i32, i32, i32) {
    %c0_i32 = arith.constant 0 : i32
    %c0_i32_0 = arith.constant 0 : i32
    %c0_i32_1 = arith.constant 0 : i32
    %c0_i32_2 = arith.constant 0 : i32
    return %c0_i32, %c0_i32_0, %c0_i32_1 : i32, i32, i32
  }
  func.func @transform_5(%arg0: i32) -> (i32, i32) {
    %c0_i32 = arith.constant 0 : i32
    %c0_i32_0 = arith.constant 0 : i32
    %c0_i32_1 = arith.constant 0 : i32
    return %c0_i32, %c0_i32_0 : i32, i32
  }
  func.func @transform_6(%arg0: i32) -> (i32, i32) {
    %c0_i32 = arith.constant 0 : i32
    %c0_i32_0 = arith.constant 0 : i32
    %c0_i32_1 = arith.constant 0 : i32
    return %c0_i32, %c0_i32_0 : i32, i32
  }
}

</mosaic_0001>

<bundles_post_ra>
// kernel: model_with_loss_forward.1
= control target key start
LH: loop header
LB: loop body
LE: loop exit
PB: predicated region body
PF: predicated region fallthrough
CT: control target
= control target key end

     0   :  { %vm58_vm0 = vcmask 1043456   ;;  %v2088_v2 = vmov 0.0   ;;  %s1388_s25 = smov 2   ;;  %v1389_v5 = vmov 0   ;;  %v1390_v8 = vmov 2   ;;  %s1393_s8 = smov 127   ;;  %s2081_s4 = inlined_call_operand.vmem [shape: f32[2,8,5], index: 4, kind: input, shape index: {}]   ;;  %s2082_s0 = inlined_call_operand.vmem [shape: f32[2,4,256], index: 0, kind: input, shape index: {}]   ;;  %s2083_s1 = inlined_call_operand.vmem [shape: f32[12,4], index: 1, kind: input, shape index: {}]   ;;  %s2084_s3 = inlined_call_operand.vmem [shape: f32[4,256], index: 3, kind: input, shape index: {}]   ;;  %s2085_s2 = inlined_call_operand.vmem [shape: f32[12,1], index: 2, kind: input, shape index: {}]   ;;  %s2086_s6 = inlined_call_operand.vmem [shape: f32[8,128], index: 6, kind: output, shape index: {1}]   ;;  %s2087_s5 = inlined_call_operand.vmem [shape: f32[8,128], index: 5, kind: output, shape index: {0}]  }
   0x1   :  { %v1434_v0 = vld [vmem:[%s2081_s4] sm:$0xff]  ;;  %127 = vmatprep.mubr.f32.mxu0 %v2088_v2  ;;  %779 = vmatprep.mubr.f32.mxu1 %v2088_v2  ;;  %v1257_v4 = vld [vmem:[%s2082_s0 + $0x8] sm:$0xff]  ;;  %vm51_vm1 = vcmask 31744   ;;  %v1391_v11 = vmov 1   ;;  %v1392_v12 = vmov 3   ;;  %v184_v18 = vlaneseq }
   0x2   :  { %v38_v1 = vld [vmem:[%s2082_s0] sm:$0xff]  ;;  %175 = vrot.lane.b32.xlu0 %v1434_v0, %s1388_s25  ;;  %1297 = vset.pattern.permute.xlu1 %v1389_v5  ;;  %v1449_v6 = vld [vmem:[%s2081_s4 + $0x8] sm:$0xff]  ;;  %v710_v7 = vcombine.high %v1257_v4, %v1257_v4  ;;  %vm173_vm2 = vcmp.ne.f32.partialorder %v1434_v0, -1.0  ;;  %v1394_v36 = vmov 4  }
   0x3   :  { %v50_v3 = vcombine.high %v38_v1, %v38_v1  ;;  %1296 = vset.pattern.permute.xlu0 %v1390_v8  ;;  %v34_v9 = vld [vmem:[%s2083_s1] sm:$0xff]  ;;  %v35_v10 = vld [vmem:[%s2083_s1 + $0x8] sm:$0xf]  ;;  %v1480_v21 = vshrl.u32 %v184_v18, 7  ;;  %v329_v35 = vsel %vm173_vm2, 1, %v1389_v5  ;;  %vm826_vm3 = vcmp.ne.f32.partialorder %v1449_v6, -1.0 }
   0x4   :  { %1258 = vmatprep.subr.msk.mxu1 %vm58_vm0, %v710_v7  ;;  %v1473_v17 = vld [vmem:[%s2084_s3] sm:$0xff]  ;;  %v886_v37 = vsel %vm826_vm3, 1, %v1389_v5  ;;  %v37_v39 = vld [vmem:[%s2085_s2 + $0x8] sm:$0xf] }
   0x5   :  { %1236 = vmatprep.subr.msk.mxu0 %vm58_vm0, %v50_v3  ;;  %1259 = vmatpush1.msk.msra.mxu1 %vm58_vm0, %v1257_v4  ;;  %v24_v19 = vrot.slane %v1473_v17, 6  ;;  %2108 = vst [vmem:[#allocation2_spill] sm:$0xff] %v1480_v21  ;;  %v1485_v24 = vsub.s32 1, %v1480_v21  ;;  %v214_v25 = vsub.s32 5, %v1480_v21  ;;  %v266_v27 = vsub.s32 4, %v1480_v21  ;;  %v36_v38 = vld [vmem:[%s2085_s2] sm:$0xff] }
   0x6   :  { %1237 = vmatpush1.msk.msra.mxu0 %vm58_vm0, %v38_v1  ;;  %828 = vrot.lane.b32.xlu0 %v1449_v6, %s1388_s25  ;;  %v1540_v50 = vsub.s32 3, %v1480_v21  ;;  %v190_v51 = vsub.s32 7, %v1480_v21  ;;  %v1544_v52 = vsub.s32 0, %v1480_v21  ;;  %v1549_v54 = vsub.s32 2, %v1480_v21 }
   0x7   :  { %1238 = vmatmul.mubr.msk.f32.vlgmr.msra.gmra.mrb[0].mxu0 %vm51_vm1, %v34_v9  ;;  %1260 = vmatmul.mubr.msk.f32.vlgmr.msra.gmra.mrb[0].mxu1 %vm51_vm1, %v34_v9  ;;  %v1477_v20 = vsub.f32 %v1473_v17, %v24_v19  ;;  %v1552_v55 = vsub.s32 6, %v1480_v21  ;;  %v267_v60 = vrot.slane %v1473_v17, %v266_v27  ;;  %v211_v61 = vrot.slane %v1473_v17, %v1485_v24 }
   0x8   :  { %133 = vmatprep.mubr.f32.mxu0 %v2088_v2  ;;  %785 = vmatprep.mubr.f32.mxu1 %v2088_v2  ;;  %2109 = vst [vmem:[#allocation3_spill] sm:$0xff] %v1544_v52  ;;  %v187_v57 = vrot.slane %v1473_v17, %v1540_v50  ;;  %v191_v58 = vrot.slane %v1473_v17, %v190_v51 }
   0x9   :  { %v28_v22 = vmul.f32 0.5, %v1477_v20  ;;  %v263_v59 = vrot.slane %v1473_v17, %v1544_v52  ;;  %v215_v62 = vrot.slane %v1473_v17, %v214_v25  ;;  %v239_v63 = vrot.slane %v1473_v17, %v1549_v54 }
   0xa   :  { %203 = vperm.xlu0 %1296, %v1434_v0   ;;  %v1244_v4 = vrot.slane %v1477_v20, 9  ;;  %v221_v9 = vrot.slane %v211_v61, %v1485_v24  ;;  %1313 = vrcp.f32 %v1477_v20 }
   0xb   :  { %1239 = vmatmul.mubr.msk.f32.gmra.mrb[2].mxu0 %vm51_vm1, %v35_v10  ;;  %1261 = vmatmul.mubr.msk.f32.gmra.mrb[2].mxu1 %vm51_vm1, %v35_v10  ;;  %v1235_v23 = vrot.slane %v28_v22, 10  ;;  %v273_v7 = vrot.slane %v263_v59, %v1544_v52  ;;  %v225_v10 = vrot.slane %v215_v62, %v1485_v24 }
   0xd   :  { %v1489_v26 = vadd.f32 %v1235_v23, %v1473_v17 }
   0xe   :  { %1299 = vset.pattern.permute.xlu0 %v1391_v11 }
   0xf   :  { %279 = vperm.xlu0 %1299, %v1434_v0   ;;  %v1494_v28 = vrot.slane %v1489_v26, %v1485_v24  ;;  %v1497_v29 = vrot.slane %v1489_v26, %v214_v25  ;;  %v1500_v30 = vrot.slane %v1489_v26, %v266_v27 }
  0x13   :  { %1302 = vset.pattern.permute.xlu0 %v1392_v12 }
  0x14   :  { %854 = vperm.xlu0 %1302, %v1449_v6  }
  0x18   :  { %1305 = vset.pattern.permute.xlu0 %v1390_v8 }
  0x74   :  { %v176_v13 = vpop.permute.xlu0 %175 }
  0x75   :  { %v178_v14 = vsub.f32 %v1434_v0, %v176_v13 }
  0x77   :  { %180 = vrot.lane.b32.xlu1 %v178_v14, %s1393_s8 }
  0x78   :  { %v829_v15 = vpop.permute.xlu0 %828 }
  0x79   :  { %v831_v16 = vsub.f32 %v1449_v6, %v829_v15 }
  0x7b   :  { %833 = vrot.lane.b32.xlu1 %v831_v16, %s1393_s8 }
  0x7f   :  { %227 = vperm.xlu1 %1297, %v1434_v0  }
  0x83   :  { %1298 = vset.pattern.permute.xlu1 %v1392_v12 }
  0x84   :  { %255 = vperm.xlu1 %1298, %v1434_v0  }
  0x88   :  { %1300 = vset.pattern.permute.xlu1 %v1390_v8 }
  0x89   :  { %838 = vperm.xlu1 %1300, %v1449_v6   ;;  %v1546_v53 = vpop.permute.xlu0 %203 }
  0x8d   :  { %1301 = vset.pattern.permute.xlu1 %v1389_v5 }
  0x8e   :  { %844 = vperm.xlu1 %1301, %v1449_v6   ;;  %v1571_v1 = vpop.permute.xlu0 %279 }
  0x92   :  { %1303 = vset.pattern.permute.xlu1 %v1391_v11  ;;  %v249_v11 = vrot.slane %v239_v63, %v1549_v54 }
  0x93   :  { %860 = vperm.xlu1 %1303, %v1449_v6   ;;  %v1584_v13 = vpop.permute.xlu0 %854 }
  0x94   :  { %v857_v27 = vmin.f32 %v249_v11, %v1584_v13 }
  0x97   :  { %1304 = vset.pattern.permute.xlu1 %v1390_v8  ;;  %v277_v8 = vrot.slane %v267_v60, %v1544_v52 }
  0x99   :  { %v283_v18 = vmax.f32 %v277_v8, %v1571_v1 }
  0xda   :  { %v1519_v40 = vpop.f32.mrb[0].mxu0  ;;  %v1521_v41 = vpop.f32.mrb[0].mxu1 }
  0xdb   :  { %v1523_v42 = vpop.f32.mrb[1].mxu0  ;;  %v1525_v43 = vpop.f32.mrb[1].mxu1 }
  0xde   :  { %v1527_v44 = vpop.f32.mrb[2].mxu0  ;;  %v1529_v45 = vpop.f32.mrb[2].mxu1 }
  0xdf   :  { %v1531_v46 = vpop.f32.mrb[3].mxu0  ;;  %v1533_v47 = vpop.f32.mrb[3].mxu1 }
  0xe9   :  { %v181_v31 = vpop.permute.xlu1 %180 }
  0xea   :  { %v183_v32 = vmul.f32 %v181_v31, %v178_v14  ;;  %v292_v14 = vmul.f32 %v1244_v4, %v1477_v20 }
  0xec   :  { %314 = vperm.xlu1 %1304, %v183_v32  }
  0xed   :  { %v834_v33 = vpop.permute.xlu1 %833 }
  0xee   :  { %v836_v34 = vmul.f32 %v834_v33, %v831_v16 }
  0xf0   :  { %871 = vperm.xlu0 %1305, %v836_v34   ;;  %1306 = vset.pattern.permute.xlu1 %v1394_v36  ;;  %v297_v34 = vrot.slane %v292_v14, %v1549_v54 }
  0xf1   :  { %331 = vperm.xlu1 %1306, %v329_v35   ;;  %v301_v35 = vrot.slane %v292_v14, %v1552_v55 }
  0xf2   :  { %v307_v61 = vrot.slane %v297_v34, %v1549_v54 }
  0xf3   :  { %v311_v62 = vrot.slane %v301_v35, %v1549_v54 }
  0xf4   :  { %1307 = vset.pattern.permute.xlu0 %v1389_v5 }
  0xf5   :  { %888 = vperm.xlu1 %1306, %v886_v37   ;;  %41 = vperm.xlu0 %1307, %v36_v38  }
  0xf9   :  { %1308 = vset.pattern.permute.xlu1 %v1389_v5  ;;  %1310 = vset.pattern.permute.xlu0 %v1394_v36  ;;  %v197_v5 = vrot.slane %v187_v57, %v1540_v50 }
  0xfa   :  { %46 = vperm.xlu1 %1308, %v37_v39   ;;  %990 = vperm.xlu0 %1310, %v1449_v6   ;;  %v201_v6 = vrot.slane %v191_v58, %v1540_v50 }
  0xfb   :  { %v206_v15 = vmin.f32 %v197_v5, %v1546_v53 }
  0xfc   :  { %v207_v16 = vmin.f32 %v201_v6, %v1546_v53 }
  0xfe   :  { %1309 = vset.pattern.permute.xlu1 %v1394_v36  ;;  %v1535_v48 = vpop.permute.xlu1 %227 }
  0xff   :  { %435 = vperm.xlu1 %1309, %v1434_v0   ;;  %v243_v0 = vrot.slane %v1473_v17, %v1552_v55  ;;  %v282_v17 = vmax.f32 %v273_v7, %v1571_v1  ;;  %v230_v19 = vmax.f32 %v221_v9, %v1535_v48  ;;  %v231_v22 = vmax.f32 %v225_v10, %v1535_v48 }
 0x101   :  { %v253_v12 = vrot.slane %v243_v0, %v1549_v54  ;;  %v232_v57 = vsub.f32 %v206_v15, %v230_v19  ;;  %v233_v58 = vsub.f32 %v207_v16, %v231_v22 }
 0x103   :  { %v1537_v49 = vpop.permute.xlu1 %255  ;;  %v858_v31 = vmin.f32 %v253_v12, %v1584_v13 }
 0x104   :  { %v258_v23 = vmin.f32 %v249_v11, %v1537_v49  ;;  %v259_v24 = vmin.f32 %v253_v12, %v1537_v49 }
 0x106   :  { %v284_v59 = vsub.f32 %v258_v23, %v282_v17  ;;  %v285_v60 = vsub.f32 %v259_v24, %v283_v18 }
 0x108   :  { %v1554_v56 = vpop.permute.xlu1 %838  ;;  %v286_v11 = vmax.f32 %v284_v59, 0.0 }
 0x109   :  { %v841_v32 = vmin.f32 %v197_v5, %v1554_v56  ;;  %v842_v33 = vmin.f32 %v201_v6, %v1554_v56  ;;  %v234_v6 = vmax.f32 %v232_v57, 0.0 }
 0x10b   :  { %v319_v18 = vmul.f32 %v286_v11, %v234_v6 }
 0x10d   :  { %v1573_v3 = vpop.permute.xlu1 %844 }
 0x10e   :  { %v847_v36 = vmax.f32 %v221_v9, %v1573_v3  ;;  %v848_v37 = vmax.f32 %v225_v10, %v1573_v3  ;;  %v235_v9 = vmax.f32 %v233_v58, 0.0  ;;  %v287_v10 = vmax.f32 %v285_v60, 0.0 }
 0x110   :  { %v849_v63 = vsub.f32 %v841_v32, %v847_v36  ;;  %v850_v0 = vsub.f32 %v842_v33, %v848_v37  ;;  %v320_v19 = vmul.f32 %v287_v10, %v235_v9 }
 0x112   :  { %v1595_v25 = vpop.permute.xlu1 %860  ;;  %v852_v14 = vmax.f32 %v850_v0, 0.0  ;;  %v1314_v0 = vpop.eup %1313 }
 0x113   :  { %v863_v38 = vmax.f32 %v273_v7, %v1595_v25  ;;  %v864_v39 = vmax.f32 %v277_v8, %v1595_v25  ;;  %v851_v7 = vmax.f32 %v849_v63, 0.0  ;;  %v1632_v9 = vrot.slane %v1314_v0, %v190_v51 }
 0x115   :  { %v865_v4 = vsub.f32 %v857_v27, %v863_v38  ;;  %v866_v5 = vsub.f32 %v858_v31, %v864_v39 }
 0x117   :  { %v867_v8 = vmax.f32 %v865_v4, 0.0  ;;  %v868_v15 = vmax.f32 %v866_v5, 0.0 }
 0x119   :  { %v876_v27 = vmul.f32 %v867_v8, %v851_v7  ;;  %v877_v31 = vmul.f32 %v868_v15, %v852_v14 }
 0x16b   :  { %v315_v12 = vpop.permute.xlu1 %314 }
 0x16c   :  { %v317_v16 = vadd.f32 %v315_v12, %v307_v61  ;;  %v318_v17 = vadd.f32 %v315_v12, %v311_v62 }
 0x16e   :  { %v321_v22 = vsub.f32 %v317_v16, %v319_v18  ;;  %v322_v23 = vsub.f32 %v318_v17, %v320_v19 }
 0x16f   :  { %v872_v24 = vpop.permute.xlu0 %871 }
 0x170   :  { %v323_v32 = vmax.f32 %v321_v22, 1e-08  ;;  %v324_v33 = vmax.f32 %v322_v23, 1e-08  ;;  %v874_v34 = vadd.f32 %v872_v24, %v307_v61  ;;  %v875_v35 = vadd.f32 %v872_v24, %v311_v62  ;;  %v332_v36 = vpop.permute.xlu1 %331 }
 0x171   :  { %vm333_vm4 = vcmp.eq.s32.totalorder %v332_v36, 1 }
 0x172   :  { %1315 = vrcp.f32 %v323_v32  ;;  %v878_v37 = vsub.f32 %v874_v34, %v876_v27  ;;  %v879_v38 = vsub.f32 %v875_v35, %v877_v31 }
 0x173   :  { %1317 = vrcp.f32 %v324_v33 }
 0x174   :  { %v880_v39 = vmax.f32 %v878_v37, 1e-08  ;;  %v881_v57 = vmax.f32 %v879_v38, 1e-08  ;;  %v42_v58 = vpop.permute.xlu0 %41  ;;  %v889_v59 = vpop.permute.xlu1 %888 }
 0x175   :  { %v1611_v20 = vadd.f32 %v1519_v40, %v42_v58  ;;  %v1614_v60 = vadd.f32 %v1523_v42, %v42_v58  ;;  %v1617_v63 = vadd.f32 %v1521_v41, %v42_v58  ;;  %v1622_v4 = vadd.f32 %v1525_v43, %v42_v58 }
 0x176   :  { %1319 = vrcp.f32 %v880_v39  ;;  %v1628_v41 = vrot.slane %v1314_v0, %v1540_v50  ;;  %v1635_v43 = vrot.slane %v1314_v0, %v1552_v55  ;;  %v1643_v50 = vrot.slane %v1314_v0, %v1549_v54 }
 0x177   :  { %1321 = vrcp.f32 %v881_v57  ;;  %v1240_v61 = vmul.f32 -1.442695, %v1611_v20  ;;  %v1241_v62 = vmul.f32 -1.442695, %v1614_v60  ;;  %v1262_v40 = vmul.f32 -1.442695, %v1617_v63 }
 0x178   :  { %v1263_v7 = vmul.f32 -1.442695, %v1622_v4  ;;  %vm890_vm5 = vcmp.eq.s32.totalorder %v889_v59, 1 }
 0x179   :  { %v47_v5 = vpop.permute.xlu1 %46  ;;  %1323 = vpow2.f32 %v1240_v61 }
 0x17a   :  { %v136_v42 = vadd.f32 %v1527_v44, %v47_v5  ;;  %v788_v6 = vadd.f32 %v1529_v45, %v47_v5  ;;  %1325 = vpow2.f32 %v1241_v62  ;;  %v1640_v45 = vrot.slane %v1489_v26, %v1544_v52 }
 0x17b   :  { %1327 = vpow2.f32 %v1262_v40  ;;  %v138_v55 = vadd.f32 %v1531_v46, %v47_v5  ;;  %v790_v16 = vadd.f32 %v1533_v47, %v47_v5 }
 0x17c   :  { %v1316_v11 = vpop.eup %1315  ;;  %v1242_v10 = vmul.f32 -1.442695, %v136_v42  ;;  %v1264_v12 = vmul.f32 -1.442695, %v788_v6 }
 0x17d   :  { %v1318_v44 = vpop.eup %1317  ;;  %v326_v14 = vmul.f32 %v1316_v11, %v319_v18  ;;  %v1243_v34 = vmul.f32 -1.442695, %v138_v55  ;;  %v1265_v39 = vmul.f32 -1.442695, %v790_v16 }
 0x17e   :  { %v328_v51 = vmul.f32 %v1318_v44, %v320_v19  ;;  %1329 = vpow2.f32 %v1242_v10 }
 0x17f   :  { %v1647_v8 = vsel %vm333_vm4, %v326_v14, -1.0  ;;  %1331 = vpow2.f32 %v1264_v12 }
 0x180   :  { %v1320_v17 = vpop.eup %1319  ;;  %v1652_v26 = vsel %vm333_vm4, %v328_v51, -1.0  ;;  %v336_v54 = vrot.slane %v1647_v8, 4  ;;  %1333 = vpow2.f32 %v1263_v7 }
 0x181   :  { %v1322_v19 = vpop.eup %1321  ;;  %v342_v46 = vrot.slane %v1652_v26, 4  ;;  %v883_v22 = vmul.f32 %v1320_v17, %v876_v27  ;;  %1335 = vpow2.f32 %v1243_v34 }
 0x182   :  { %v337_v32 = vmax.f32 %v1647_v8, %v336_v54  ;;  %v885_v47 = vmul.f32 %v1322_v19, %v877_v31  ;;  %1337 = vpow2.f32 %v1265_v39 }
 0x183   :  { %v1324_v35 = vpop.eup %1323  ;;  %v343_v36 = vmax.f32 %v1652_v26, %v342_v46  ;;  %v1663_v37 = vsel %vm890_vm5, %v883_v22, -1.0 }
 0x184   :  { %v338_v27 = vrot.slane %v337_v32, 2  ;;  %v1667_v57 = vsel %vm890_vm5, %v885_v47, -1.0  ;;  %v893_v58 = vrot.slane %v1663_v37, 4  ;;  %v1326_v61 = vpop.eup %1325  ;;  %v152_v11 = vadd.f32 1.0, %v1324_v35 }
 0x185   :  { %v344_v62 = vrot.slane %v343_v36, 2  ;;  %v899_v0 = vrot.slane %v1667_v57, 4  ;;  %v1328_v59 = vpop.eup %1327  ;;  %v153_v16 = vadd.f32 1.0, %v1326_v61 }
 0x186   :  { %v339_v42 = vmax.f32 %v337_v32, %v338_v27  ;;  %v894_v6 = vmax.f32 %v1663_v37, %v893_v58  ;;  %1339 = vrcp.f32 %v152_v11  ;;  %v804_v35 = vadd.f32 1.0, %v1328_v59 }
 0x187   :  { %v345_v10 = vmax.f32 %v343_v36, %v344_v62  ;;  %v900_v12 = vmax.f32 %v1667_v57, %v899_v0 }
 0x188   :  { %v1330_v44 = vpop.eup %1329  ;;  %v340_v14 = vrot.slane %v339_v42, 1  ;;  %v895_v51 = vrot.slane %v894_v6, 2 }
 0x189   :  { %v1332_v17 = vpop.eup %1331  ;;  %v346_v54 = vrot.slane %v345_v10, 1  ;;  %v901_v19 = vrot.slane %v900_v12, 2  ;;  %v154_v46 = vadd.f32 1.0, %v1330_v44 }
 0x18a   :  { %v1334_v32 = vpop.eup %1333  ;;  %v1679_v47 = vmax.f32 %v339_v42, %v340_v14  ;;  %v896_v34 = vmax.f32 %v894_v6, %v895_v51  ;;  %v806_v27 = vadd.f32 1.0, %v1332_v17 }
 0x18b   :  { %v1681_v36 = vmax.f32 %v345_v10, %v346_v54  ;;  %v902_v39 = vmax.f32 %v900_v12, %v901_v19  ;;  %1341 = vrcp.f32 %v154_v46  ;;  %v1688_v0 = vadd.f32 1.0, %v1334_v32 }
 0x18c   :  { %2110 = vst [vmem:[#allocation4_spill] sm:$0xff] %v1679_v47  ;;  %vm350_vm6 = vcmp.eq.f32.partialorder %v1647_v8, %v1679_v47  ;;  %v897_v58 = vrot.slane %v896_v34, 1  ;;  %1343 = vrcp.f32 %v153_v16  ;;  %vm452_vm8 = vcmp.ge.f32.partialorder %v1679_v47, 0.5  ;;  %v1336_v8 = vpop.eup %1335 }
 0x18d   :  { %2111 = vst [vmem:[#allocation5_spill] sm:$0xff] %v1681_v36  ;;  %vm351_vm7 = vcmp.eq.f32.partialorder %v1652_v26, %v1681_v36  ;;  %v352_v61 = vsel %vm350_vm6, %v1480_v21, 8  ;;  %v903_v62 = vrot.slane %v902_v39, 1  ;;  %1345 = vrcp.f32 %v804_v35  ;;  %v1338_v12 = vpop.eup %1337 }
 0x18e   :  { %v353_v42 = vsel %vm351_vm7, %v1480_v21, 8  ;;  %v354_v6 = vrot.slane %v352_v61, 4  ;;  %v1691_v11 = vmax.f32 %v896_v34, %v897_v58  ;;  %1347 = vrcp.f32 %v806_v27 }
 0x18f   :  { %v363_v59 = vrot.slane %v353_v42, 4  ;;  %v1693_v10 = vmax.f32 %v902_v39, %v903_v62  ;;  %vm453_vm11 = vcmp.ge.f32.partialorder %v1681_v36, 0.5  ;;  %v1702_v26 = vsel %vm452_vm8, 1.0, %v2088_v2 }
 0x190   :  { %2112 = vst [vmem:[#allocation6_spill] sm:$0xff] %v1691_v11  ;;  %vm355_vm9 = vcmp.lt.s32.totalorder %v352_v61, %v354_v6  ;;  %vm905_vm10 = vcmp.eq.f32.partialorder %v1663_v37, %v1691_v11  ;;  %2114 = vst [vmem:[#allocation8_spill] sm:$0xff] %v1702_v26  ;;  %v155_v46 = vadd.f32 1.0, %v1336_v8  ;;  %v1711_v32 = vsel %vm453_vm11, 1.0, %v2088_v2  ;;  %v1713_v34 = vpop.eup %1339 }
 0x191   :  { %2113 = vst [vmem:[#allocation7_spill] sm:$0xff] %v1693_v10  ;;  %v356_v44 = vsel %vm355_vm9, %v352_v61, %v354_v6  ;;  %vm364_vm12 = vcmp.lt.s32.totalorder %v353_v42, %v363_v59  ;;  %vm906_vm13 = vcmp.eq.f32.partialorder %v1667_v57, %v1693_v10  ;;  %v907_v14 = vsel %vm905_vm10, %v1480_v21, 8  ;;  %2115 = vst [vmem:[#allocation9_spill] sm:$0xff] %v1711_v32 }
 0x192   :  { %v357_v51 = vrot.slane %v356_v44, 2  ;;  %v365_v16 = vsel %vm364_vm12, %v353_v42, %v363_v59  ;;  %v908_v17 = vsel %vm906_vm13, %v1480_v21, 8  ;;  %v909_v37 = vrot.slane %v907_v14, 4  ;;  %2116 = vst [vmem:[#allocation10_spill] sm:$0xff] %v1713_v34 }
 0x193   :  { %v366_v54 = vrot.slane %v365_v16, 2  ;;  %v918_v19 = vrot.slane %v908_v17, 4  ;;  %v807_v57 = vadd.f32 1.0, %v1338_v12  ;;  %v462_v35 = vadd.f32 %v1711_v32, %v1702_v26 }
 0x194   :  { %vm358_vm14 = vcmp.lt.s32.totalorder %v356_v44, %v357_v51  ;;  %vm910_vm15 = vcmp.lt.s32.totalorder %v907_v14, %v909_v37  ;;  %1349 = vrcp.f32 %v155_v46  ;;  %vm1007_vm3 = vcmp.ge.f32.partialorder %v1691_v11, 0.5 }
 0x195   :  { %v1717_v39 = vpop.eup %1341  ;;  %v359_v27 = vsel %vm358_vm14, %v356_v44, %v357_v51  ;;  %vm367_vm1 = vcmp.lt.s32.totalorder %v365_v16, %v366_v54  ;;  %v911_v58 = vsel %vm910_vm15, %v907_v14, %v909_v37  ;;  %vm919_vm2 = vcmp.lt.s32.totalorder %v908_v17, %v918_v19  ;;  %463 = vadd.xlane.f32.xlu1 %v462_v35 }
 0x196   :  { %v1719_v61 = vpop.eup %1343  ;;  %v360_v62 = vrot.slane %v359_v27, 1  ;;  %v368_v42 = vsel %vm367_vm1, %v365_v16, %v366_v54  ;;  %v912_v6 = vrot.slane %v911_v58, 2  ;;  %v920_v59 = vsel %vm919_vm2, %v908_v17, %v918_v19 }
 0x197   :  { %2117 = vst [vmem:[#allocation11_spill] sm:$0xff] %v1719_v61  ;;  %v369_v8 = vrot.slane %v368_v42, 1  ;;  %v921_v22 = vrot.slane %v920_v59, 2  ;;  %v1722_v12 = vpop.eup %1345  ;;  %1351 = vrcp.f32 %v807_v57  ;;  %v1735_v54 = vsel %vm1007_vm3, 1.0, %v2088_v2 }
 0x198   :  { %2118 = vst [vmem:[#allocation12_spill] sm:$0xff] %v1722_v12  ;;  %vm361_vm4 = vcmp.lt.s32.totalorder %v359_v27, %v360_v62  ;;  %vm913_vm5 = vcmp.lt.s32.totalorder %v911_v58, %v912_v6  ;;  %v1725_v14 = vpop.eup %1347  ;;  %vm1008_vm12 = vcmp.ge.f32.partialorder %v1693_v10, 0.5  ;;  %1353 = vrcp.f32 %v1688_v0 }
 0x199   :  { %v362_v51 = vsel %vm361_vm4, %v359_v27, %v360_v62  ;;  %vm370_vm6 = vcmp.lt.s32.totalorder %v368_v42, %v369_v8  ;;  %v1727_v16 = vsel %vm913_vm5, %v911_v58, %v912_v6  ;;  %vm922_vm7 = vcmp.lt.s32.totalorder %v920_v59, %v921_v22 }
 0x19a   :  { %v371_v17 = vsel %vm370_vm6, %v368_v42, %v369_v8  ;;  %vm372_vm9 = vcmp.eq.s32.totalorder %v1480_v21, %v362_v51  ;;  %v1730_v37 = vsel %vm922_vm7, %v920_v59, %v921_v22 }
 0x19b   :  { %vm373_vm10 = vcmp.eq.s32.totalorder %v1480_v21, %v371_v17  ;;  %v1739_v19 = vsel %vm372_vm9, 1.0, %v2088_v2 }
 0x19c   :  { %2119 = vst [vmem:[#allocation13_spill] sm:$0xff] %v1739_v19  ;;  %v1744_v35 = vsel %vm373_vm10, 1.0, %v2088_v2  ;;  %v378_v22 = vmul.f32 %v1739_v19, %v1535_v48  ;;  %v392_v27 = vmul.f32 %v1739_v19, %v1571_v1  ;;  %v406_v58 = vmul.f32 %v1739_v19, %v1546_v53 }
 0x19d   :  { %2120 = vst [vmem:[#allocation14_spill] sm:$0xff] %v1744_v35  ;;  %v379_v62 = vmul.f32 %v1744_v35, %v1535_v48  ;;  %v393_v42 = vmul.f32 %v1744_v35, %v1571_v1  ;;  %v407_v6 = vmul.f32 %v1744_v35, %v1546_v53  ;;  %v420_v59 = vmul.f32 %v1739_v19, %v1537_v49 }
 0x19e   :  { %v380_v8 = vrot.slane %v378_v22, 4  ;;  %v394_v51 = vrot.slane %v392_v27, 4  ;;  %v408_v17 = vrot.slane %v406_v58, 4  ;;  %v421_v55 = vmul.f32 %v1744_v35, %v1537_v49  ;;  %v1763_v53 = vpop.eup %1349 }
 0x19f   :  { %v386_v7 = vrot.slane %v379_v62, 4  ;;  %v400_v40 = vrot.slane %v393_v42, 4  ;;  %v414_v38 = vrot.slane %v407_v6, 4  ;;  %v422_v33 = vrot.slane %v420_v59, 4 }
 0x1a0   :  { %v381_v48 = vadd.f32 %v380_v8, %v378_v22  ;;  %v395_v24 = vadd.f32 %v394_v51, %v392_v27  ;;  %v409_v23 = vadd.f32 %v408_v17, %v406_v58  ;;  %v428_v1 = vrot.slane %v421_v55, 4 }
 0x1a1   :  { %v387_v44 = vadd.f32 %v386_v7, %v379_v62  ;;  %v401_v5 = vadd.f32 %v400_v40, %v393_v42  ;;  %v415_v31 = vadd.f32 %v414_v38, %v407_v6  ;;  %v423_v18 = vadd.f32 %v422_v33, %v420_v59  ;;  %v1765_v15 = vpop.eup %1351 }
 0x1a2   :  { %v382_v2 = vrot.slane %v381_v48, 2  ;;  %v396_v49 = vrot.slane %v395_v24, 2  ;;  %v410_v57 = vrot.slane %v409_v23, 2  ;;  %v429_v46 = vadd.f32 %v428_v1, %v421_v55 }
 0x1a3   :  { %v388_v52 = vrot.slane %v387_v44, 2  ;;  %v402_v11 = vrot.slane %v401_v5, 2  ;;  %v416_v22 = vrot.slane %v415_v31, 2  ;;  %v424_v27 = vrot.slane %v423_v18, 2 }
 0x1a4   :  { %v383_v58 = vadd.f32 %v382_v2, %v381_v48  ;;  %v397_v8 = vadd.f32 %v396_v49, %v395_v24  ;;  %v411_v51 = vadd.f32 %v410_v57, %v409_v23  ;;  %v430_v17 = vrot.slane %v429_v46, 2 }
 0x1a5   :  { %v389_v32 = vadd.f32 %v388_v52, %v387_v44  ;;  %v403_v26 = vadd.f32 %v402_v11, %v401_v5  ;;  %v417_v7 = vadd.f32 %v416_v22, %v415_v31  ;;  %v425_v40 = vadd.f32 %v424_v27, %v423_v18 }
 0x1a6   :  { %v384_v38 = vrot.slane %v383_v58, 1  ;;  %v398_v33 = vrot.slane %v397_v8, 1  ;;  %v412_v62 = vrot.slane %v411_v51, 1  ;;  %v431_v42 = vadd.f32 %v430_v17, %v429_v46 }
 0x1a7   :  { %v390_v6 = vrot.slane %v389_v32, 1  ;;  %v404_v59 = vrot.slane %v403_v26, 1  ;;  %v418_v36 = vrot.slane %v417_v7, 1  ;;  %v426_v55 = vrot.slane %v425_v40, 1 }
 0x1a8   :  { %v1767_v1 = vadd.f32 %v384_v38, %v383_v58  ;;  %v1769_v12 = vadd.f32 %v398_v33, %v397_v8  ;;  %v413_v2 = vadd.f32 %v412_v62, %v411_v51  ;;  %v432_v24 = vrot.slane %v431_v42, 1 }
 0x1a9   :  { %v1771_v23 = vadd.f32 %v390_v6, %v389_v32  ;;  %v1773_v52 = vadd.f32 %v404_v59, %v403_v26  ;;  %v419_v31 = vadd.f32 %v418_v36, %v417_v7  ;;  %v427_v18 = vadd.f32 %v426_v55, %v425_v40 }
 0x1aa   :  { %v433_v5 = vadd.f32 %v432_v24, %v431_v42  ;;  %v1776_v11 = vsub.f32 %v413_v2, %v1767_v1  ;;  %v2121_v44 = vrot.slane %v1727_v16, 1  ;;  %v2122_v46 = vrot.slane %v1730_v37, 1 }
 0x1ab   :  { %v1785_v57 = vsub.f32 %v419_v31, %v1771_v23  ;;  %v2126_v49 = vmov 0.0   ;;  %v1799_v27 = vsub.f32 %v427_v18, %v1769_v12 }
 0x1ac   :  { %vm916_vm13 = vcmp.lt.s32.totalorder %v1727_v16, %v2121_v44  ;;  %vm925_vm14 = vcmp.lt.s32.totalorder %v1730_v37, %v2122_v46  ;;  %v2124_v26 = vmov %v2121_v44  ;;  %v2125_v32 = vmov %v2122_v46 }
 0x1ad   :  { %2123 = vst [vmem:[#allocation15_spill] sm:$0xff] %v1785_v57  ;;  %v917_v36 = vsel %vm916_vm13, %v1727_v16, %v2124_v26  ;;  %v926_v48 = vsel %vm925_vm14, %v1730_v37, %v2125_v32  ;;  %v1796_v22 = vsel %vm1008_vm12, 1.0, %v2126_v49  ;;  %v1802_v58 = vsub.f32 %v433_v5, %v1773_v52 }
 0x1ae   :  { %vm927_vm15 = vcmp.eq.s32.totalorder %v1480_v21, %v917_v36  ;;  %vm928_vm1 = vcmp.eq.s32.totalorder %v1480_v21, %v926_v48  ;;  %v546_v8 = vmul.f32 0.5, %v1776_v11  ;;  %v547_v51 = vmul.f32 0.5, %v1785_v57 }
 0x1af   :  { %v1807_v16 = vsel %vm927_vm15, 1.0, %v2126_v49  ;;  %v1810_v37 = vsel %vm928_vm1, 1.0, %v2126_v49  ;;  %v540_v0 = vmax.f32 %v1776_v11, 1.0 }
 0x1b0   :  { %2127 = vst [vmem:[#allocation16_spill] sm:$0xff] %v1807_v16  ;;  %2128 = vst [vmem:[#allocation17_spill] sm:$0xff] %v1810_v37  ;;  %v933_v17 = vmul.f32 %v1807_v16, %v1573_v3  ;;  %v934_v7 = vmul.f32 %v1810_v37, %v1573_v3  ;;  %v947_v40 = vmul.f32 %v1807_v16, %v1595_v25 }
 0x1b1   :  { %v948_v38 = vmul.f32 %v1810_v37, %v1595_v25  ;;  %v961_v33 = vmul.f32 %v1807_v16, %v1554_v56  ;;  %v962_v62 = vmul.f32 %v1810_v37, %v1554_v56  ;;  %v975_v42 = vmul.f32 %v1807_v16, %v1584_v13 }
 0x1b2   :  { %v976_v6 = vmul.f32 %v1810_v37, %v1584_v13  ;;  %v935_v59 = vrot.slane %v933_v17, 4  ;;  %v941_v3 = vrot.slane %v934_v7, 4  ;;  %v949_v55 = vrot.slane %v947_v40, 4 }
 0x1b3   :  { %v955_v2 = vrot.slane %v948_v38, 4  ;;  %v963_v24 = vrot.slane %v961_v33, 4  ;;  %v969_v31 = vrot.slane %v962_v62, 4  ;;  %v977_v18 = vrot.slane %v975_v42, 4 }
 0x1b4   :  { %v983_v25 = vrot.slane %v976_v6, 4  ;;  %v936_v5 = vadd.f32 %v935_v59, %v933_v17  ;;  %v942_v44 = vadd.f32 %v941_v3, %v934_v7  ;;  %v950_v46 = vadd.f32 %v949_v55, %v947_v40 }
 0x1b5   :  { %v956_v26 = vadd.f32 %v955_v2, %v948_v38  ;;  %v964_v36 = vadd.f32 %v963_v24, %v961_v33  ;;  %v970_v56 = vadd.f32 %v969_v31, %v962_v62  ;;  %v978_v32 = vadd.f32 %v977_v18, %v975_v42 }
 0x1b6   :  { %v984_v48 = vadd.f32 %v983_v25, %v976_v6  ;;  %v937_v49 = vrot.slane %v936_v5, 2  ;;  %v943_v10 = vrot.slane %v942_v44, 2  ;;  %v951_v47 = vrot.slane %v950_v46, 2 }
 0x1b7   :  { %v957_v13 = vrot.slane %v956_v26, 2  ;;  %v965_v21 = vrot.slane %v964_v36, 2  ;;  %v971_v61 = vrot.slane %v970_v56, 2  ;;  %v979_v34 = vrot.slane %v978_v32, 2 }
 0x1b8   :  { %v985_v37 = vrot.slane %v984_v48, 2  ;;  %v938_v16 = vadd.f32 %v937_v49, %v936_v5  ;;  %v944_v35 = vadd.f32 %v943_v10, %v942_v44  ;;  %v952_v19 = vadd.f32 %v951_v47, %v950_v46 }
 0x1b9   :  { %v958_v57 = vadd.f32 %v957_v13, %v956_v26  ;;  %v966_v17 = vadd.f32 %v965_v21, %v964_v36  ;;  %v972_v7 = vadd.f32 %v971_v61, %v970_v56  ;;  %v980_v40 = vadd.f32 %v979_v34, %v978_v32 }
 0x1ba   :  { %v986_v38 = vadd.f32 %v985_v37, %v984_v48  ;;  %v939_v33 = vrot.slane %v938_v16, 1  ;;  %v945_v62 = vrot.slane %v944_v35, 1  ;;  %v953_v42 = vrot.slane %v952_v19, 1 }
 0x1bb   :  { %v959_v6 = vrot.slane %v958_v57, 1  ;;  %v967_v59 = vrot.slane %v966_v17, 1  ;;  %v973_v3 = vrot.slane %v972_v7, 1  ;;  %v981_v55 = vrot.slane %v980_v40, 1 }
 0x1bc   :  { %v987_v2 = vrot.slane %v986_v38, 1  ;;  %v940_v24 = vadd.f32 %v939_v33, %v938_v16  ;;  %v946_v31 = vadd.f32 %v945_v62, %v944_v35  ;;  %v954_v18 = vadd.f32 %v953_v42, %v952_v19 }
 0x1bd   :  { %v960_v25 = vadd.f32 %v959_v6, %v958_v57  ;;  %v968_v5 = vadd.f32 %v967_v59, %v966_v17  ;;  %v974_v10 = vadd.f32 %v973_v3, %v972_v7  ;;  %v982_v47 = vadd.f32 %v981_v55, %v980_v40 }
 0x1be   :  { %v988_v44 = vadd.f32 %v987_v2, %v986_v38  ;;  %v548_v21 = vadd.f32 %v546_v8, %v1767_v1  ;;  %v549_v34 = vadd.f32 %v547_v51, %v1771_v23  ;;  %v550_v61 = vmul.f32 0.5, %v1799_v27 }
 0x1bf   :  { %v551_v37 = vmul.f32 0.5, %v1802_v58  ;;  %v1834_v46 = vsub.f32 %v968_v5, %v940_v24  ;;  %v1836_v26 = vsub.f32 %v974_v10, %v946_v31  ;;  %v1838_v16 = vsub.f32 %v982_v47, %v954_v18 }
 0x1c0   :  { %v1840_v19 = vsub.f32 %v988_v44, %v960_v25  ;;  %v552_v35 = vadd.f32 %v550_v61, %v1769_v12  ;;  %v590_v1 = vsub.f32 %v548_v21, %v1494_v28  ;;  %v591_v23 = vsub.f32 %v549_v34, %v1497_v29 }
 0x1c1   :  { %v553_v57 = vadd.f32 %v551_v37, %v1773_v52  ;;  %v1101_v8 = vmul.f32 0.5, %v1834_v46  ;;  %v1102_v51 = vmul.f32 0.5, %v1836_v26  ;;  %v1105_v36 = vmul.f32 0.5, %v1838_v16 }
 0x1c2   :  { %v1106_v56 = vmul.f32 0.5, %v1840_v19  ;;  %v565_v32 = vsub.f32 %v552_v35, %v1640_v45  ;;  %v602_v12 = vmul.f32 %v1628_v41, %v590_v1  ;;  %v603_v52 = vmul.f32 %v1632_v9, %v591_v23 }
 0x1c3   :  { %v566_v48 = vsub.f32 %v553_v57, %v1500_v30  ;;  %v1103_v49 = vadd.f32 %v1101_v8, %v940_v24  ;;  %v1104_v13 = vadd.f32 %v1102_v51, %v946_v31  ;;  %v1107_v17 = vadd.f32 %v1105_v36, %v954_v18  ;;  %v2134_v8 = vld [vmem:[#allocation15_spill] sm:$0xff] }
 0x1c4   :  { %v1108_v7 = vadd.f32 %v1106_v56, %v960_v25  ;;  %v578_v40 = vmul.f32 %v1643_v50, %v565_v32  ;;  %v2129_v33 = vrot.slane %v1611_v20, 1  ;;  %v2130_v42 = vrot.slane %v1614_v60, 1 }
 0x1c5   :  { %v579_v38 = vmul.f32 %v1635_v43, %v566_v48  ;;  %v1109_v59 = vsub.f32 %v1107_v17, %v1640_v45  ;;  %v1113_v55 = vsub.f32 %v1103_v49, %v1494_v28  ;;  %v1114_v2 = vsub.f32 %v1104_v13, %v1497_v29 }
 0x1c6   :  { %v636_v62 = vsub.f32 %v602_v12, %v2129_v33  ;;  %v637_v6 = vsub.f32 %v603_v52, %v2130_v42  ;;  %v1110_v3 = vsub.f32 %v1108_v7, %v1500_v30  ;;  %v818_v24 = vmax.f32 %v1725_v14, 0.0001 }
 0x1c7   :  { %v616_v31 = vsub.f32 %v578_v40, %v1611_v20  ;;  %v617_v18 = vsub.f32 %v579_v38, %v1614_v60  ;;  %v167_v25 = vmax.f32 %v1763_v53, 0.0001  ;;  %v1111_v5 = vmul.f32 %v1109_v59, %v1643_v50 }
 0x1c8   :  { %v1112_v10 = vmul.f32 %v1110_v3, %v1635_v43  ;;  %v1115_v45 = vmul.f32 %v1113_v55, %v1628_v41  ;;  %v1116_v30 = vmul.f32 %v1114_v2, %v1632_v9  ;;  %v819_v28 = vmax.f32 %v1765_v15, 0.0001  ;;  %v1914_v2 = vpop.eup %1353 }
 0x1c9   :  { %v1872_v47 = vmin.f32 %v167_v25, 0.9999  ;;  %v1017_v29 = vadd.f32 %v1796_v22, %v1735_v54  ;;  %v1129_v14 = vsub.f32 %v1111_v5, %v1617_v63  ;;  %v2131_v44 = vrot.slane %v1617_v63, 1 }
 0x1ca   :  { %v1130_v53 = vsub.f32 %v1112_v10, %v1622_v4  ;;  %v2132_v34 = vrot.slane %v1622_v4, 1  ;;  %v2133_v37 = vmax.f32 %v1717_v39, 0.0001  ;;  %v618_v35 = vand.u32 2147483647, %v616_v31 }
 0x1cb   :  { %v1882_v21 = vsub.f32 %v1115_v45, %v2131_v44  ;;  %v478_v57 = vsub.f32 1.0, %v1872_v47  ;;  %1018 = vadd.xlane.f32.xlu0 %v1017_v29  ;;  %v1894_v1 = vmin.f32 %v818_v24, 0.9999  ;;  %v619_v23 = vand.u32 2147483647, %v617_v18 }
 0x1cc   :  { %v1886_v61 = vsub.f32 %v1116_v30, %v2132_v34  ;;  %v1890_v15 = vmin.f32 %v2133_v37, 0.9999  ;;  %v541_v51 = vmax.f32 %v2134_v8, 1.0  ;;  %v544_v36 = vmax.f32 %v1799_v27, 1.0 }
 0x1cd   :  { %v1898_v56 = vand.u32 2147483647, %v1129_v14  ;;  %v499_v32 = vrot.slane %v1872_v47, 4  ;;  %v1901_v39 = vmin.f32 %v819_v28, 0.9999  ;;  %v545_v48 = vmax.f32 %v1802_v58, 1.0 }
 0x1ce   :  { %v1904_v12 = vand.u32 2147483647, %v1130_v53  ;;  %v604_v11 = vmul.f32 %v1643_v50, %v544_v36  ;;  %v610_v52 = vmul.f32 %v1628_v41, %v540_v0  ;;  %v611_v49 = vmul.f32 %v1632_v9, %v541_v51 }
 0x1cf   :  { %v1909_v13 = vrot.slane %v478_v57, 4  ;;  %v605_v27 = vmul.f32 %v1635_v43, %v545_v48  ;;  %vm620_vm2 = vcmp.le.f32.partialorder %v618_v35, 0.11111111  ;;  %v622_v17 = vmul.f32 4.5, %v618_v35 }
 0x1d0   :  { %1355 = vlog2.f32 %v604_v11  ;;  %v623_v7 = vmul.f32 4.5, %v619_v23  ;;  %v1249_v40 = vadd.f32 -0.055555556, %v618_v35  ;;  %v1250_v38 = vadd.f32 -0.055555556, %v619_v23  ;;  %v2135_v11 = vld [vmem:[#allocation13_spill] sm:$0xff] }
 0x1d1   :  { %1357 = vlog2.f32 %v605_v27  ;;  %v624_v58 = vmul.f32 %v622_v17, %v618_v35  ;;  %v638_v33 = vand.u32 2147483647, %v636_v62  ;;  %v639_v42 = vand.u32 2147483647, %v637_v6 }
 0x1d2   :  { %1359 = vlog2.f32 %v610_v52  ;;  %v625_v59 = vmul.f32 %v623_v7, %v619_v23  ;;  %v1095_v3 = vmax.f32 %v1834_v46, 1.0  ;;  %v1096_v55 = vmax.f32 %v1836_v26, 1.0 }
 0x1d3   :  { %1361 = vlog2.f32 %v611_v49  ;;  %vm621_vm4 = vcmp.le.f32.partialorder %v619_v23, 0.11111111  ;;  %v628_v24 = vsel %vm620_vm2, %v624_v58, %v1249_v40  ;;  %vm640_vm5 = vcmp.le.f32.partialorder %v638_v33, 0.11111111 }
 0x1d4   :  { %v629_v31 = vsel %vm621_vm4, %v625_v59, %v1250_v38  ;;  %vm641_vm6 = vcmp.le.f32.partialorder %v639_v42, 0.11111111  ;;  %v642_v18 = vmul.f32 4.5, %v638_v33  ;;  %v643_v25 = vmul.f32 4.5, %v639_v42 }
 0x1d5   :  { %v1251_v5 = vadd.f32 -0.055555556, %v638_v33  ;;  %v1099_v62 = vmax.f32 %v1838_v16, 1.0  ;;  %v1100_v6 = vmax.f32 %v1840_v19, 1.0  ;;  %v1123_v46 = vmul.f32 %v1095_v3, %v1628_v41 }
 0x1d6   :  { %v644_v10 = vmul.f32 %v642_v18, %v638_v33  ;;  %v645_v26 = vmul.f32 %v643_v25, %v639_v42  ;;  %v1252_v45 = vadd.f32 -0.055555556, %v639_v42  ;;  %v1124_v30 = vmul.f32 %v1096_v55, %v1632_v9 }
 0x1d7   :  { %v1117_v28 = vmul.f32 %v1099_v62, %v1643_v50  ;;  %v1118_v29 = vmul.f32 %v1100_v6, %v1635_v43  ;;  %1363 = vlog2.f32 %v1123_v46  ;;  %vm1133_vm7 = vcmp.le.f32.partialorder %v1898_v56, 0.11111111  ;;  %v1932_v50 = vpop.permute.xlu1 %435 }
 0x1d8   :  { %v648_v14 = vsel %vm640_vm5, %v644_v10, %v1251_v5  ;;  %v649_v16 = vsel %vm641_vm6, %v645_v26, %v1252_v45  ;;  %1365 = vlog2.f32 %v1124_v30  ;;  %v1135_v19 = vmul.f32 4.5, %v1898_v56 }
 0x1d9   :  { %v1927_v41 = vadd.f32 %v648_v14, %v628_v24  ;;  %v1929_v53 = vadd.f32 %v649_v16, %v629_v31  ;;  %1367 = vlog2.f32 %v1117_v28  ;;  %v1136_v9 = vmul.f32 4.5, %v1904_v12 }
 0x1da   :  { %v1356_v43 = vpop.eup %1355  ;;  %1369 = vlog2.f32 %v1118_v29  ;;  %v1137_v44 = vmul.f32 %v1135_v19, %v1898_v56  ;;  %v1271_v34 = vadd.f32 -0.055555556, %v1898_v56  ;;  %v1272_v37 = vadd.f32 -0.055555556, %v1904_v12 }
 0x1db   :  { %v1358_v35 = vpop.eup %1357  ;;  %v607_v57 = vmul.f32 0.6931472, %v1356_v43  ;;  %v1138_v0 = vmul.f32 %v1136_v9, %v1904_v12  ;;  %v1151_v23 = vand.u32 2147483647, %v1882_v21  ;;  %v1152_v8 = vand.u32 2147483647, %v1886_v61 }
 0x1dc   :  { %v1360_v51 = vpop.eup %1359  ;;  %v609_v36 = vmul.f32 0.6931472, %v1358_v35  ;;  %vm1134_vm9 = vcmp.le.f32.partialorder %v1904_v12, 0.11111111  ;;  %v1141_v48 = vsel %vm1133_vm7, %v1137_v44, %v1271_v34  ;;  %v1945_v52 = vmul.f32 %v2135_v11, %v1932_v50 }
 0x1dd   :  { %v1362_v49 = vpop.eup %1361  ;;  %v613_v27 = vmul.f32 0.6931472, %v1360_v51  ;;  %v2136_v17 = vrot.slane %v1611_v20, 2  ;;  %v1142_v40 = vsel %vm1134_vm9, %v1138_v0, %v1272_v37  ;;  %vm1153_vm10 = vcmp.le.f32.partialorder %v1151_v23, 0.11111111 }
 0x1de   :  { %v615_v21 = vmul.f32 0.6931472, %v1362_v49  ;;  %v2137_v61 = vrot.slane %v1614_v60, 2  ;;  %vm1154_vm13 = vcmp.le.f32.partialorder %v1152_v8, 0.11111111  ;;  %v1155_v12 = vmul.f32 4.5, %v1151_v23 }
 0x1df   :  { %v656_v7 = vsub.f32 %v607_v57, %v2136_v17  ;;  %v2138_v56 = vrot.slane %v1611_v20, 3  ;;  %v1156_v42 = vmul.f32 4.5, %v1152_v8  ;;  %v1273_v59 = vadd.f32 -0.055555556, %v1151_v23 }
 0x1e0   :  { %v657_v38 = vsub.f32 %v609_v36, %v2137_v61  ;;  %v2139_v55 = vrot.slane %v1614_v60, 3  ;;  %v1157_v31 = vmul.f32 %v1155_v12, %v1151_v23  ;;  %v1274_v18 = vadd.f32 -0.055555556, %v1152_v8 }
 0x1e1   :  { %v658_v58 = vand.u32 2147483647, %v656_v7  ;;  %v676_v33 = vsub.f32 %v613_v27, %v2138_v56  ;;  %v1364_v25 = vpop.eup %1363  ;;  %v1158_v6 = vmul.f32 %v1156_v42, %v1152_v8  ;;  %v2140_v17 = vrot.slane %v1617_v63, 2 }
 0x1e2   :  { %v659_v3 = vand.u32 2147483647, %v657_v38  ;;  %v677_v24 = vsub.f32 %v615_v21, %v2139_v55  ;;  %v1366_v46 = vpop.eup %1365  ;;  %v1161_v20 = vsel %vm1153_vm10, %v1157_v31, %v1273_v59  ;;  %v1126_v14 = vmul.f32 0.6931472, %v1364_v25 }
 0x1e3   :  { %vm660_vm14 = vcmp.le.f32.partialorder %v658_v58, 0.11111111  ;;  %v662_v5 = vmul.f32 4.5, %v658_v58  ;;  %v1253_v62 = vadd.f32 -0.055555556, %v658_v58  ;;  %v1368_v45 = vpop.eup %1367  ;;  %v1162_v43 = vsel %vm1154_vm13, %v1158_v6, %v1274_v18 }
 0x1e4   :  { %vm661_vm15 = vcmp.le.f32.partialorder %v659_v3, 0.11111111  ;;  %v663_v10 = vmul.f32 4.5, %v659_v3  ;;  %v1254_v26 = vadd.f32 -0.055555556, %v659_v3  ;;  %v1370_v60 = vpop.eup %1369  ;;  %v1163_v27 = vadd.f32 %v1161_v20, %v1141_v48  ;;  %v2144_v48 = vld [vmem:[#allocation14_spill] sm:$0xff] }
 0x1e5   :  { %v664_v30 = vmul.f32 %v662_v5, %v658_v58  ;;  %v678_v28 = vand.u32 2147483647, %v676_v33  ;;  %v679_v29 = vand.u32 2147483647, %v677_v24  ;;  %v1120_v19 = vmul.f32 0.6931472, %v1368_v45 }
 0x1e6   :  { %v665_v16 = vmul.f32 %v663_v10, %v659_v3  ;;  %v1128_v9 = vmul.f32 0.6931472, %v1366_v46  ;;  %v1122_v11 = vmul.f32 0.6931472, %v1370_v60  ;;  %v1164_v8 = vadd.f32 %v1162_v43, %v1142_v40 }
 0x1e7   :  { %v668_v44 = vsel %vm660_vm14, %v664_v30, %v1253_v62  ;;  %vm680_vm1 = vcmp.le.f32.partialorder %v678_v28, 0.11111111  ;;  %vm681_vm2 = vcmp.le.f32.partialorder %v679_v29, 0.11111111  ;;  %v682_v34 = vmul.f32 4.5, %v678_v28 }
 0x1e8   :  { %v669_v37 = vsel %vm661_vm15, %v665_v16, %v1254_v26  ;;  %v670_v35 = vadd.f32 %v668_v44, %v1927_v41  ;;  %v683_v57 = vmul.f32 4.5, %v679_v29  ;;  %v1255_v0 = vadd.f32 -0.055555556, %v678_v28 }
 0x1e9   :  { %v671_v23 = vadd.f32 %v669_v37, %v1929_v53  ;;  %v684_v51 = vmul.f32 %v682_v34, %v678_v28  ;;  %v1256_v36 = vadd.f32 -0.055555556, %v679_v29  ;;  %v1169_v7 = vsub.f32 %v1120_v19, %v2140_v17  ;;  %v2145_v19 = vld [vmem:[#allocation16_spill] sm:$0xff] }
 0x1ea   :  { %v685_v49 = vmul.f32 %v683_v57, %v679_v29  ;;  %v2141_v61 = vrot.slane %v1622_v4, 2  ;;  %v2142_v12 = vrot.slane %v1617_v63, 3  ;;  %v2143_v58 = vrot.slane %v1622_v4, 3 }
 0x1eb   :  { %v688_v21 = vsel %vm680_vm1, %v684_v51, %v1255_v0  ;;  %v1171_v42 = vand.u32 2147483647, %v1169_v7  ;;  %v439_v40 = vmul.f32 %v2144_v48, %v1932_v50  ;;  %v440_v18 = vrot.slane %v1945_v52, 4  ;;  %v991_v50 = vpop.permute.xlu0 %990  ;;  %v2146_v0 = vld [vmem:[#allocation17_spill] sm:$0xff] }
 0x1ec   :  { %v1170_v38 = vsub.f32 %v1122_v11, %v2141_v61  ;;  %v1189_v41 = vsub.f32 %v1126_v14, %v2142_v12  ;;  %v1190_v56 = vsub.f32 %v1128_v9, %v2143_v58  ;;  %v689_v53 = vsel %vm681_vm2, %v685_v49, %v1256_v36  ;;  %v2147_v49 = vld [vmem:[#allocation10_spill] sm:$0xff] }
 0x1ed   :  { %v1970_v33 = vadd.f32 %v688_v21, %v670_v35  ;;  %v1974_v59 = vadd.f32 %v689_v53, %v671_v23  ;;  %vm1173_vm4 = vcmp.le.f32.partialorder %v1171_v42, 0.11111111  ;;  %v1175_v31 = vmul.f32 4.5, %v1171_v42  ;;  %v2148_v21 = vld [vmem:[#allocation11_spill] sm:$0xff] }
 0x1ee   :  { %v1172_v3 = vand.u32 2147483647, %v1170_v38  ;;  %v1191_v55 = vand.u32 2147483647, %v1189_v41  ;;  %v1192_v24 = vand.u32 2147483647, %v1190_v56  ;;  %v441_v28 = vadd.f32 %v440_v18, %v1945_v52 }
 0x1ef   :  { %v1275_v63 = vadd.f32 -0.055555556, %v1171_v42  ;;  %v1033_v4 = vsub.f32 1.0, %v1901_v39  ;;  %v1177_v62 = vmul.f32 %v1175_v31, %v1171_v42  ;;  %v446_v29 = vrot.slane %v439_v40, 4 }
 0x1f0   :  { %vm1174_vm5 = vcmp.le.f32.partialorder %v1172_v3, 0.11111111  ;;  %v1176_v25 = vmul.f32 4.5, %v1172_v3  ;;  %v1276_v5 = vadd.f32 -0.055555556, %v1172_v3  ;;  %v1195_v6 = vmul.f32 4.5, %v1191_v55 }
 0x1f1   :  { %vm1193_vm6 = vcmp.le.f32.partialorder %v1191_v55, 0.11111111  ;;  %vm1194_vm7 = vcmp.le.f32.partialorder %v1192_v24, 0.11111111  ;;  %v1196_v10 = vmul.f32 4.5, %v1192_v24  ;;  %v1181_v45 = vsel %vm1173_vm4, %v1177_v62, %v1275_v63 }
 0x1f2   :  { %v1178_v46 = vmul.f32 %v1176_v25, %v1172_v3  ;;  %v1277_v26 = vadd.f32 -0.055555556, %v1191_v55  ;;  %v1278_v20 = vadd.f32 -0.055555556, %v1192_v24  ;;  %v1197_v30 = vmul.f32 %v1195_v6, %v1191_v55 }
 0x1f3   :  { %v1183_v60 = vadd.f32 %v1181_v45, %v1163_v27  ;;  %v1198_v16 = vmul.f32 %v1196_v10, %v1192_v24  ;;  %v993_v9 = vmul.f32 %v2145_v19, %v991_v50  ;;  %v442_v34 = vrot.slane %v441_v28, 2 }
 0x1f4   :  { %v1182_v14 = vsel %vm1174_vm5, %v1178_v46, %v1276_v5  ;;  %v1201_v44 = vsel %vm1193_vm6, %v1197_v30, %v1277_v26  ;;  %v447_v37 = vadd.f32 %v446_v29, %v439_v40  ;;  %v994_v23 = vmul.f32 %v2146_v0, %v991_v50 }
 0x1f5   :  { %v1184_v43 = vadd.f32 %v1182_v14, %v1164_v8  ;;  %v1202_v35 = vsel %vm1194_vm7, %v1198_v16, %v1278_v20  ;;  %v1203_v57 = vadd.f32 %v1201_v44, %v1183_v60  ;;  %v995_v51 = vrot.slane %v993_v9, 4  ;;  %v2149_v16 = vld [vmem:[#allocation2_spill] sm:$0xff] }
 0x1f6   :  { %v443_v52 = vadd.f32 %v442_v34, %v441_v28  ;;  %v448_v11 = vrot.slane %v447_v37, 2  ;;  %v164_v17 = vmax.f32 %v2147_v49, 0.0001  ;;  %v1001_v8 = vrot.slane %v994_v23, 4  ;;  %v2151_v34 = vld [vmem:[#allocation12_spill] sm:$0xff] }
 0x1f7   :  { %v1204_v36 = vadd.f32 %v1202_v35, %v1184_v43  ;;  %v1987_v27 = vmul.f32 %v1735_v54, %v1203_v57  ;;  %v996_v7 = vadd.f32 %v995_v51, %v993_v9  ;;  %v165_v61 = vmax.f32 %v2148_v21, 0.0001  ;;  %v2153_v21 = vld [vmem:[#allocation8_spill] sm:$0xff] }
 0x1f8   :  { %v444_v12 = vrot.slane %v443_v52, 1  ;;  %v449_v41 = vadd.f32 %v448_v11, %v447_v37  ;;  %v168_v58 = vmin.f32 %v164_v17, 0.9999  ;;  %v1054_v56 = vrot.slane %v1901_v39, 4 }
 0x1f9   :  { %v1991_v38 = vmul.f32 %v1796_v22, %v1204_v36  ;;  %v997_v53 = vrot.slane %v996_v7, 2  ;;  %v1002_v42 = vadd.f32 %v1001_v8, %v994_v23  ;;  %v169_v48 = vmin.f32 %v165_v61, 0.9999  ;;  %v2152_v36 = vld [vmem:[#allocation5_spill] sm:$0xff] }
 0x1fa   :  { %v1994_v40 = vrot.slane %v1033_v4, 4  ;;  %v445_v3 = vadd.f32 %v444_v12, %v443_v52  ;;  %v450_v54 = vrot.slane %v449_v41, 1  ;;  %v475_v55 = vsub.f32 1.0, %v168_v58  ;;  %v2154_v12 = vld [vmem:[#allocation9_spill] sm:$0xff] }
 0x1fb   :  { %v998_v24 = vadd.f32 %v997_v53, %v996_v7  ;;  %v1003_v31 = vrot.slane %v1002_v42, 2  ;;  %v476_v63 = vsub.f32 1.0, %v169_v48  ;;  %v477_v18 = vsub.f32 1.0, %v1890_v15 }
 0x1fc   :  { %v451_v22 = vadd.f32 %v450_v54, %v449_v41  ;;  %v1279_v25 = vtrunc.f32 %v445_v3  ;;  %v483_v5 = vrot.slane %v475_v55, 4  ;;  %v495_v62 = vrot.slane %v168_v58, 4 }
 0x1fd   :  { %v999_v6 = vrot.slane %v998_v24, 1  ;;  %v1004_v50 = vadd.f32 %v1003_v31, %v1002_v42  ;;  %v484_v46 = vrot.slane %v477_v18, 4  ;;  %v486_v10 = vrot.slane %v476_v63, 4  ;;  %v2155_v31 = vld [vmem:[#allocation6_spill] sm:$0xff]  ;;  %v2158_v18 = vld [vmem:[#allocation7_spill] sm:$0xff] }
 0x1fe   :  { %v1280_v26 = vcvt.f32.s32 %v1279_v25  ;;  %v1281_v20 = vtrunc.f32 %v451_v22  ;;  %v496_v4 = vrot.slane %v1890_v15, 4  ;;  %v498_v45 = vrot.slane %v169_v48, 4  ;;  %v2150_v15 = vld [vmem:[#allocation4_spill] sm:$0xff] }
 0x1ff   :  { %v1000_v30 = vadd.f32 %v999_v6, %v998_v24  ;;  %v1005_v28 = vrot.slane %v1004_v50, 1  ;;  %v485_v29 = vsel %vm58_vm0, %v483_v5, %v484_v46  ;;  %v488_v14 = vsel %vm58_vm0, %v486_v10, %v1909_v13 }
 0x200   :  { %v1282_v60 = vcvt.f32.s32 %v1281_v20  ;;  %vm467_vm9 = vcmp.eq.s32.totalorder %v2149_v16, %v1280_v26  ;;  %v497_v19 = vsel %vm58_vm0, %v495_v62, %v496_v4  ;;  %v500_v9 = vsel %vm58_vm0, %v498_v45, %v499_v32 }
 0x201   :  { %v1006_v43 = vadd.f32 %v1005_v28, %v1004_v50  ;;  %v1283_v44 = vtrunc.f32 %v1000_v30  ;;  %vm471_vm10 = vmand %vm467_vm9, %vm452_vm8  ;;  %v816_v37 = vmax.f32 %v2151_v34, 0.0001  ;;  %v817_v35 = vmax.f32 %v1914_v2, 0.0001 }
 0x202   :  { %vm468_vm13 = vcmp.eq.s32.totalorder %v2149_v16, %v1282_v60  ;;  %v1395_v13 = vmov 0.75   ;;  %v503_v0 = vsel %vm471_vm10, %v485_v29, %v497_v19  ;;  %v505_v23 = vsel %vm471_vm10, %v497_v19, %v485_v29 }
 0x203   :  { %v473_v57 = vsel %vm471_vm10, 0.25, %v1395_v13  ;;  %v1284_v51 = vcvt.f32.s32 %v1283_v44  ;;  %v1285_v47 = vtrunc.f32 %v1006_v43  ;;  %vm472_vm14 = vmand %vm468_vm13, %vm453_vm11  ;;  %1371 = vlog2.f32 %v505_v23 }
 0x204   :  { %v513_v32 = vmul.f32 %v503_v0, %v473_v57  ;;  %v474_v52 = vsel %vm472_vm14, 0.25, %v1395_v13  ;;  %v504_v11 = vsel %vm472_vm14, %v488_v14, %v500_v9  ;;  %v506_v49 = vsel %vm472_vm14, %v500_v9, %v488_v14 }
 0x205   :  { %v820_v17 = vmin.f32 %v816_v37, 0.9999  ;;  %v1286_v2 = vcvt.f32.s32 %v1285_v47  ;;  %1373 = vlog2.f32 %v506_v49  ;;  %v514_v7 = vmul.f32 %v504_v11, %v474_v52 }
 0x206   :  { %v515_v8 = vmul.f32 %v513_v32, %v503_v0  ;;  %v692_v61 = vmul.f32 %v2153_v21, %v1970_v33  ;;  %v693_v41 = vmul.f32 %v2154_v12, %v1974_v59  ;;  %v821_v58 = vmin.f32 %v817_v35, 0.9999 }
 0x207   :  { %vm1022_vm15 = vcmp.eq.s32.totalorder %v2149_v16, %v1284_v51  ;;  %v516_v53 = vmul.f32 %v514_v7, %v504_v11  ;;  %vm1023_vm1 = vcmp.eq.s32.totalorder %v2149_v16, %v1286_v2  ;;  %v1030_v42 = vsub.f32 1.0, %v820_v17 }
 0x208   :  { %v1032_v48 = vsub.f32 1.0, %v1894_v1  ;;  %v1031_v3 = vsub.f32 1.0, %v821_v58  ;;  %v1050_v54 = vrot.slane %v820_v17, 4  ;;  %v1051_v55 = vrot.slane %v1894_v1, 4  ;;  %vm2025_vm2 = vmand %vm1022_vm15, %vm1007_vm3 }
 0x209   :  { %v1053_v24 = vrot.slane %v821_v58, 4  ;;  %v1038_v59 = vrot.slane %v1030_v42, 4  ;;  %vm694_vm4 = vcmask 1040384   ;;  %vm2031_vm5 = vmand %vm1023_vm1, %vm1008_vm12  ;;  %vm455_vm6 = vcmp.lt.f32.partialorder %v2152_v36, 0.4 }
 0x20a   :  { %v1039_v63 = vrot.slane %v1032_v48, 4  ;;  %v1041_v25 = vrot.slane %v1031_v3, 4  ;;  %v1052_v5 = vsel %vm58_vm0, %v1050_v54, %v1051_v55  ;;  %v695_v6 = vsel %vm694_vm4, %v692_v61, 0.0  ;;  %vm457_vm9 = vmor %vm453_vm11, %vm455_vm6 }
 0x20b   :  { %v1055_v1 = vsel %vm58_vm0, %v1053_v24, %v1054_v56  ;;  %v696_v50 = vsel %vm694_vm4, %v693_v41, 0.0  ;;  %v1208_v28 = vsel %vm694_vm4, %v1991_v38, 0.0  ;;  %v1029_v38 = vsel %vm2031_vm5, 0.25, %v1395_v13 }
 0x20c   :  { %v1040_v62 = vsel %vm58_vm0, %v1038_v59, %v1039_v63  ;;  %v1043_v46 = vsel %vm58_vm0, %v1041_v25, %v1994_v40  ;;  %v697_v20 = vadd.f32 %v696_v50, %v695_v6  ;;  %v1207_v40 = vsel %vm694_vm4, %v1987_v27, 0.0 }
 0x20d   :  { %v1058_v10 = vsel %vm2025_vm2, %v1040_v62, %v1052_v5  ;;  %v1060_v26 = vsel %vm2025_vm2, %v1052_v5, %v1040_v62  ;;  %v1372_v4 = vpop.eup %1371  ;;  %v1059_v39 = vsel %vm2031_vm5, %v1043_v46, %v1055_v1  ;;  %v1061_v56 = vsel %vm2031_vm5, %v1055_v1, %v1043_v46 }
 0x20e   :  { %1375 = vlog2.f32 %v1060_v26  ;;  %v508_v45 = vmul.f32 0.6931472, %v1372_v4  ;;  %vm454_vm0 = vcmp.lt.f32.partialorder %v2150_v15, 0.4  ;;  %v1209_v60 = vadd.f32 %v1208_v28, %v1207_v40 }
 0x20f   :  { %1377 = vlog2.f32 %v1061_v56  ;;  %v1374_v30 = vpop.eup %1373  ;;  %vm456_vm7 = vmor %vm452_vm8, %vm454_vm0  ;;  %v1028_v27 = vsel %vm2025_vm2, 0.25, %v1395_v13  ;;  %v1069_v57 = vmul.f32 %v1059_v39, %v1029_v38  ;;  %vm1009_vm8 = vcmp.lt.f32.partialorder %v2155_v31, 0.4 }
 0x210   :  { %v510_v29 = vmul.f32 0.6931472, %v1374_v30  ;;  %v511_v14 = vsub.f32 0.0, %v508_v45  ;;  %v1068_v34 = vmul.f32 %v1058_v10, %v1028_v27  ;;  %vm1010_vm10 = vcmp.lt.f32.partialorder %v2158_v18, 0.4  ;;  %vm1011_vm11 = vmor %vm1007_vm3, %vm1009_vm8  ;;  %v2161_v45 = vld [vmem:[#allocation3_spill] sm:$0xff] }
 0x211   :  { %v1071_v13 = vmul.f32 %v1069_v57, %v1059_v39  ;;  %vm1012_vm13 = vmor %vm1008_vm12, %vm1010_vm10 }
 0x212   :  { %v512_v16 = vsub.f32 0.0, %v510_v29  ;;  %v517_v19 = vmul.f32 %v515_v8, %v511_v14  ;;  %v1070_v47 = vmul.f32 %v1068_v34, %v1058_v10 }
 0x214   :  { %v518_v9 = vmul.f32 %v516_v53, %v512_v16  ;;  %v523_v43 = vsel %vm456_vm7, %v517_v19, 0.0 }
 0x216   :  { %v524_v44 = vsel %vm457_vm9, %v518_v9, 0.0 }
 0x217   :  { %v525_v35 = vadd.f32 %v524_v44, %v523_v43 }
 0x218   :  { %v1376_v37 = vpop.eup %1375 }
 0x219   :  { %v1378_v15 = vpop.eup %1377  ;;  %v1063_v0 = vmul.f32 0.6931472, %v1376_v37  ;;  %526 = vadd.xlane.f32.xlu1 %v525_v35 }
 0x21a   :  { %v1065_v23 = vmul.f32 0.6931472, %v1378_v15 }
 0x21b   :  { %v1066_v51 = vsub.f32 0.0, %v1063_v0 }
 0x21c   :  { %v1067_v32 = vsub.f32 0.0, %v1065_v23 }
 0x21d   :  { %v1072_v52 = vmul.f32 %v1070_v47, %v1066_v51  ;;  %698 = vadd.xlane.f32.xlu1 %v697_v20 }
 0x21e   :  { %v1073_v36 = vmul.f32 %v1071_v13, %v1067_v32 }
 0x21f   :  { %v1078_v11 = vsel %vm1011_vm11, %v1072_v52, 0.0 }
 0x220   :  { %v1079_v49 = vsel %vm1012_vm13, %v1073_v36, 0.0 }
 0x221   :  { %v1080_v17 = vadd.f32 %v1079_v49, %v1078_v11 }
 0x222   :  { %v464_v2 = vpop.xlane.xlu1 %463 }
 0x223   :  { %1081 = vadd.xlane.f32.xlu0 %v1080_v17  ;;  %v700_v8 = vmul.f32 4.0, %v464_v2  ;;  %v534_v42 = vmax.f32 %v464_v2, 1.0  ;;  %vm704_vm3 = vcmp.gt.f32.partialorder %v464_v2, 0.0 }
 0x225   :  { %v701_v61 = vmax.f32 %v700_v8, 1.0 }
 0x227   :  { %1210 = vadd.xlane.f32.xlu0 %v1209_v60  ;;  %1379 = vrcp.f32 %v701_v61 }
 0x231   :  { %v1380_v33 = vpop.eup %1379 }
 0x258   :  { %v1019_v7 = vpop.xlane.xlu0 %1018 }
 0x259   :  { %v1212_v21 = vmul.f32 4.0, %v1019_v7  ;;  %v1089_v3 = vmax.f32 %v1019_v7, 1.0  ;;  %vm1216_vm12 = vcmp.gt.f32.partialorder %v1019_v7, 0.0 }
 0x25b   :  { %v1213_v12 = vmax.f32 %v1212_v21, 1.0 }
 0x25d   :  { %1381 = vrcp.f32 %v1213_v12 }
 0x25e   :  { %1383 = vrcp.f32 %v534_v42 }
 0x25f   :  { %1385 = vrcp.f32 %v1089_v3 }
 0x267   :  { %v1382_v18 = vpop.eup %1381 }
 0x268   :  { %v1384_v4 = vpop.eup %1383 }
 0x269   :  { %v1386_v56 = vpop.eup %1385 }
 0x2a6   :  { %v527_v41 = vpop.xlane.xlu1 %526 }
 0x2a7   :  { %v528_v58 = vrot.slane %v527_v41, 4 }
 0x2a9   :  { %v529_v53 = vadd.f32 %v528_v58, %v527_v41 }
 0x2aa   :  { %v699_v55 = vpop.xlane.xlu1 %698 }
 0x2ab   :  { %v530_v48 = vrot.slane %v529_v53, 2  ;;  %v703_v63 = vmul.f32 %v1380_v33, %v699_v55 }
 0x2ad   :  { %v531_v24 = vadd.f32 %v530_v48, %v529_v53  ;;  %v705_v6 = vsel %vm704_vm3, %v703_v63, 0.0 }
 0x2af   :  { %v532_v25 = vrot.slane %v531_v24, 1 }
 0x2b0   :  { %v1082_v54 = vpop.xlane.xlu0 %1081 }
 0x2b1   :  { %v1083_v31 = vrot.slane %v1082_v54, 4  ;;  %v533_v10 = vadd.f32 %v532_v25, %v531_v24 }
 0x2b3   :  { %v1084_v59 = vadd.f32 %v1083_v31, %v1082_v54  ;;  %v536_v30 = vmul.f32 %v1384_v4, %v533_v10 }
 0x2b4   :  { %v1211_v22 = vpop.xlane.xlu0 %1210 }
 0x2b5   :  { %v1085_v5 = vrot.slane %v1084_v59, 2  ;;  %v1215_v1 = vmul.f32 %v1382_v18, %v1211_v22 }
 0x2b7   :  { %v1086_v62 = vadd.f32 %v1085_v5, %v1084_v59  ;;  %v1217_v50 = vsel %vm1216_vm12, %v1215_v1, 0.0 }
 0x2b8   :  { %v1218_v46 = vadd.f32 %v1217_v50, %v705_v6 }
 0x2b9   :  { %v1087_v26 = vrot.slane %v1086_v62, 1 }
 0x2ba   :  { %v1221_v20 = vmul.f32 0.5, %v1218_v46 }
 0x2bb   :  { %v1088_v39 = vadd.f32 %v1087_v26, %v1086_v62 }
 0x2bc   :  { %v1225_v40 = vrot.slane %v1221_v20, %v2161_v45 }
 0x2bd   :  { %v1091_v28 = vmul.f32 %v1386_v56, %v1088_v39 }
 0x2be   :  { %1226 = vst [vmem:[%s2086_s6] sm:$0xff] %v1225_v40 }
 0x2bf   :  { %v1092_v29 = vadd.f32 %v1091_v28, %v536_v30 }
 0x2c1   :  { %v1219_v14 = vmul.f32 0.5, %v1092_v29 }
 0x2c3   :  { %1220 = vst [vmem:[%s2087_s5] sm:$0xff] %v1219_v14 }

</bundles_post_ra>
